<compile_context>
chip_gen: v7x
topology: tpu7x:2x2x1
jax: 0.10.0
libtpu: 0.0.40
codegen_flags: <defaults>
</compile_context>

<pallas_src>
import functools

import jax
import jax.numpy as jnp
from jax import lax
from jax.experimental import pallas as pl
from jax.experimental.pallas import tpu as pltpu


def _round_up(x, m):
    return (x + m - 1) // m * m


def _vmem_capacity_bytes():
    try:
        return int(pltpu.get_tpu_info().vmem_capacity_bytes)
    except Exception:
        return 64 * 1024 * 1024  # conservative default (v7x per-TensorCore VMEM)


def gru_recurrent_kernel(gi_ref, whh_ref, bhn_ref, out_ref, h_scratch, *, unroll):
    """One grid step == one block of Tc timesteps of the GRU recurrence.

    gi_ref   : (Tc, Bp, 3*Hp) bf16/f32  precomputed input projection (+ folded biases), r|z|n
    whh_ref  : (Hp, 3*Hp)     bf16/f32  hidden->hidden weights (transposed), time-invariant
    bhn_ref  : (1, Hp)        f32       hidden bias of the n gate (must stay inside r*(.))
    out_ref  : (Tc, Bp, Hp)   f32       hidden-state outputs for this time block
    h_scratch: (Bp, Hp)       f32       hidden state carried across grid iterations
    """
    c = pl.program_id(0)

    @pl.when(c == 0)
    def _init():
        h_scratch[...] = jnp.zeros_like(h_scratch)

    bp, hp = h_scratch.shape
    tc = gi_ref.shape[0]

    # Hoist the (1, Hp) -> (Bp, Hp) bias broadcast out of the (unrolled) time loop:
    # JAX does not CSE broadcast_in_dim, so inside the loop it would be re-materialized
    # every timestep on the serial critical path.
    bhn_b = jnp.broadcast_to(bhn_ref[...], (bp, hp))

    def step(t, h):
        gi = gi_ref[t]                                 # (Bp, 3Hp), low-precision operand
        h_lo = h.astype(whh_ref.dtype)                 # bf16 operand for the MXU; h stays f32

        # W_hh^T stays in VMEM; slice the ref per slab right next to each matmul push
        # instead of hoisting the whole (Hp, 3Hp) tile into vregs (avoids spills).
        # r/z slab first so the EUP sigmoids can start while the n slab is still
        # streaming through the MXU.
        gh_rz = jnp.dot(h_lo, whh_ref[:, 0:2 * hp],
                        preferred_element_type=jnp.float32)          # (Bp, 2Hp) f32
        r = jax.nn.sigmoid(gi[:, 0:hp].astype(jnp.float32) + gh_rz[:, 0:hp])
        z = jax.nn.sigmoid(gi[:, hp:2 * hp].astype(jnp.float32) + gh_rz[:, hp:2 * hp])

        gh_n = jnp.dot(h_lo, whh_ref[:, 2 * hp:3 * hp],
                       preferred_element_type=jnp.float32)           # (Bp, Hp) f32
        n = jnp.tanh(gi[:, 2 * hp:3 * hp].astype(jnp.float32) + r * (gh_n + bhn_b))

        h_new = (1.0 - z) * n + z * h
        out_ref[t] = h_new.astype(out_ref.dtype)       # full, unmasked (8,128) tile store
        return h_new

    # Bounded unroll: keeps MXU/EUP/VPU overlap visible to the scheduler without the
    # code-size / vreg-pressure blowup of fully unrolling large time blocks.
    h_scratch[...] = lax.fori_loop(0, tc, step, h_scratch[...], unroll=unroll)


@functools.partial(jax.jit, static_argnames=("time_block", "compute_dtype"))
def temporal_gru_forward(x, w_ih, w_hh, b_ih, b_hh, *, time_block=32,
                         compute_dtype=jnp.bfloat16):
    """x: (B, T, I) float32. Weights in PyTorch layout:
       w_ih: (3H, I), w_hh: (3H, H), b_ih/b_hh: (3H,).
       Returns out: (B, T, H) float32 — the full hidden-state sequence (h0 = 0)."""
    B, T, I = x.shape
    H = w_ih.shape[0] // 3
    f32 = jnp.float32

    Hp = _round_up(H, 128)           # lane-dense per-gate hidden width
    Bp = _round_up(B, 8)             # sublane-dense batch
    Tc = max(1, min(time_block, T))  # timesteps per grid step (refined below)

    # ---------------- VMEM-aware tiling (v7x: 64 MiB, v5e/v6e: 128 MiB) ----------------
    gi_b = jnp.dtype(compute_dtype).itemsize
    w_b = jnp.dtype(compute_dtype).itemsize
    out_b = 4
    vmem_cap = _vmem_capacity_bytes()
    budget = int(0.70 * vmem_cap)

    def footprint(tc, w_bufs):
        return (2 * tc * Bp * 3 * Hp * gi_b       # gi time block (double-buffered)
                + 2 * tc * Bp * Hp * out_b        # out time block (double-buffered)
                + w_bufs * Hp * 3 * Hp * w_b      # W_hh^T
                + w_bufs * Hp * 4                 # b_hn
                + Bp * Hp * 4)                    # carried hidden state

    # Time-invariant operands have a constant index_map, so a second pipeline buffer is
    # pure VMEM waste.  Request single-buffering only when that waste is significant
    # (large Hp / tight VMEM, e.g. v7x); tiny configs stay on the default pipeline path.
    single_buffer_invariants = (Hp * 3 * Hp * w_b > (4 << 20)) or (footprint(Tc, 2) > budget)
    w_bufs = 1 if single_buffer_invariants else 2

    while Tc > 1 and footprint(Tc, w_bufs) > budget:
        Tc = max(1, Tc // 2)
    Tp = _round_up(T, Tc)

    # Bounded unroll factor that divides Tc exactly.
    unroll = next(u for u in (8, 4, 2, 1) if Tc % u == 0)

    vmem_limit = int(min(0.92 * vmem_cap, max(32 << 20, 1.5 * footprint(Tc, w_bufs))))

    # ---------------- pad parameters per-gate into lane-aligned Hp slabs (r|z|n) --------
    w_ih_g = w_ih.reshape(3, H, I).astype(f32)
    w_hh_g = w_hh.reshape(3, H, H).astype(f32)
    b_ih_g = b_ih.reshape(3, H).astype(f32)
    b_hh_g = b_hh.reshape(3, H).astype(f32)

    w_ih_p = jnp.zeros((3, Hp, I), f32).at[:, :H, :].set(w_ih_g)
    w_hh_p = jnp.zeros((3, Hp, Hp), f32).at[:, :H, :H].set(w_hh_g)
    b_ih_p = jnp.zeros((3, Hp), f32).at[:, :H].set(b_ih_g)
    b_hh_p = jnp.zeros((3, Hp), f32).at[:, :H].set(b_hh_g)

    # Fold b_ih (all gates) and b_hr/b_hz into the precomputed input projection; b_hn must
    # stay inside the r*(.) term, so it is passed to the kernel separately (in f32).
    gate_fold_mask = jnp.array([1.0, 1.0, 0.0], f32)[:, None]
    b_fold = (b_ih_p + gate_fold_mask * b_hh_p).reshape(3 * Hp)
    b_hn = b_hh_p[2].reshape(1, Hp)

    wih_t = w_ih_p.reshape(3 * Hp, I).T.astype(compute_dtype)       # (I, 3Hp)
    whh_t = w_hh_p.reshape(3 * Hp, Hp).T.astype(compute_dtype)      # (Hp, 3Hp)

    # ---------------- input projection: one big GEMM, built directly TIME-MAJOR ---------
    # Transposing x (B*T*I elements) here is far cheaper than transposing the (Tp,Bp,3Hp)
    # gi tensor after the GEMM; gi lands in HBM already in the kernel's layout.
    x_tm = jnp.transpose(x, (1, 0, 2)).astype(compute_dtype)        # (T, B, I)
    x_p = jnp.zeros((Tp, Bp, I), compute_dtype).at[:T, :B, :].set(x_tm)
    gi = jnp.dot(x_p.reshape(Tp * Bp, I), wih_t,
                 preferred_element_type=f32) + b_fold
    gi_tm = gi.reshape(Tp, Bp, 3 * Hp).astype(compute_dtype)        # (Tp, Bp, 3Hp)

    # ---------------- recurrent Pallas kernel ------------------------------------------
    if single_buffer_invariants:
        whh_spec = pl.BlockSpec((Hp, 3 * Hp), lambda c: (0, 0), pipeline_mode=pl.Buffered(1))
        bhn_spec = pl.BlockSpec((1, Hp), lambda c: (0, 0), pipeline_mode=pl.Buffered(1))
    else:
        whh_spec = pl.BlockSpec((Hp, 3 * Hp), lambda c: (0, 0))
        bhn_spec = pl.BlockSpec((1, Hp), lambda c: (0, 0))

    out_tm = pl.pallas_call(
        functools.partial(gru_recurrent_kernel, unroll=unroll),
        out_shape=jax.ShapeDtypeStruct((Tp, Bp, Hp), f32),
        grid_spec=pltpu.PrefetchScalarGridSpec(
            num_scalar_prefetch=0,
            grid=(Tp // Tc,),
            in_specs=[
                pl.BlockSpec((Tc, Bp, 3 * Hp), lambda c: (c, 0, 0)),  # gi time block
                whh_spec,                                             # W_hh^T (invariant)
                bhn_spec,                                             # b_hn   (invariant)
            ],
            out_specs=pl.BlockSpec((Tc, Bp, Hp), lambda c: (c, 0, 0)),
            scratch_shapes=[pltpu.VMEM((Bp, Hp), jnp.float32)],       # carried hidden state
        ),
        compiler_params=pltpu.CompilerParams(
            dimension_semantics=("arbitrary",),   # sequential recurrence over time blocks
            vmem_limit_bytes=vmem_limit,
        ),
    )(gi_tm, whh_t, b_hn)

    # Unpad + back to PyTorch's (B, T, H) batch-first convention.  This sits inside the
    # same jit as the pallas_call so XLA can fuse it with downstream consumers; callers
    # that can consume time-major output should take out_tm[:T, :B, :H] directly instead.
    return out_tm[:T, :B, :H].transpose(1, 0, 2)


def gru_reference(x, w_ih, w_hh, b_ih, b_hh):
    """Pure-JAX reference matching torch.nn.GRU(batch_first=True) forward."""
    B, T, I = x.shape
    H = w_hh.shape[1]

    def step(h, x_t):
        gi = x_t @ w_ih.T + b_ih
        gh = h @ w_hh.T + b_hh
        i_r, i_z, i_n = gi[:, :H], gi[:, H:2 * H], gi[:, 2 * H:]
        h_r, h_z, h_n = gh[:, :H], gh[:, H:2 * H], gh[:, 2 * H:]
        r = jax.nn.sigmoid(i_r + h_r)
        z = jax.nn.sigmoid(i_z + h_z)
        n = jnp.tanh(i_n + r * h_n)
        h_new = (1.0 - z) * n + z * h
        return h_new, h_new

    h0 = jnp.zeros((B, H), jnp.float32)
    _, outs = lax.scan(step, h0, jnp.transpose(x, (1, 0, 2)))
    return jnp.transpose(outs, (1, 0, 2))


if __name__ == "__main__":
    # Small shapes consistent with the module's forward: x is (batch, seq, input_size).
    batch, seq, input_size, hidden_size = 2, 8, 16, 32

    key = jax.random.PRNGKey(0)
    kx, k1, k2, k3, k4 = jax.random.split(key, 5)

    x = jax.random.normal(kx, (batch, seq, input_size), dtype=jnp.float32)

    # Deterministic parameter init mimicking PyTorch: U(-1/sqrt(H), 1/sqrt(H)).
    bound = 1.0 / jnp.sqrt(jnp.float32(hidden_size))
    w_ih = jax.random.uniform(k1, (3 * hidden_size, input_size), jnp.float32, -bound, bound)
    w_hh = jax.random.uniform(k2, (3 * hidden_size, hidden_size), jnp.float32, -bound, bound)
    b_ih = jax.random.uniform(k3, (3 * hidden_size,), jnp.float32, -bound, bound)
    b_hh = jax.random.uniform(k4, (3 * hidden_size,), jnp.float32, -bound, bound)

    out = jax.block_until_ready(temporal_gru_forward(x, w_ih, w_hh, b_ih, b_hh))
    ref = jax.block_until_ready(gru_reference(x, w_ih, w_hh, b_ih, b_hh))

    assert out.shape == (batch, seq, hidden_size), out.shape
    max_err = float(jnp.max(jnp.abs(out - ref)))
    # bf16 MXU operands (gi, W_hh) -> loosened tolerance; gate math / state stay f32.
    assert max_err < 3e-2, max_err

    print("KERNEL_OK")
</pallas_src>

<mosaic_0001>
module attributes {stable_mosaic.version = 11 : i64} {
  func.func @gru_recurrent_kernel(%arg0: i32, %arg1: memref<8x8x384xbf16, #tpu.memory_space<vmem>>, %arg2: memref<128x384xbf16, #tpu.memory_space<vmem>>, %arg3: memref<1x128xf32, #tpu.memory_space<vmem>>, %arg4: memref<8x8x128xf32, #tpu.memory_space<vmem>>, %arg5: memref<8x128xf32, #tpu.memory_space<vmem>>) attributes {dimension_semantics = [#tpu.dimension_semantics<arbitrary>], iteration_bounds = array<i64: 1>, scalar_prefetch = 0 : i64, scratch_operands = 1 : i64, tpu.core_type = #tpu.core_type<tc>, window_params = [{transform_indices = @transform_0, window_bounds = array<i64: 8, 8, 384>}, {pipeline_mode = #tpu.pipeline_mode<synchronous>, transform_indices = @transform_1, window_bounds = array<i64: 128, 384>}, {pipeline_mode = #tpu.pipeline_mode<synchronous>, transform_indices = @transform_2, window_bounds = array<i64: 1, 128>}, {transform_indices = @transform_3, window_bounds = array<i64: 8, 8, 128>}]} {
    %c0_i32 = arith.constant 0 : i32
    %0 = arith.cmpi eq, %arg0, %c0_i32 : i32
    %1 = arith.extui %0 : i1 to i32
    %c0_i32_0 = arith.constant 0 : i32
    %2 = arith.cmpi ne, %1, %c0_i32_0 : i32
    scf.if %2 {
      %cst_109 = arith.constant 0.000000e+00 : f32
      %336 = vector.broadcast %cst_109 : f32 to vector<8x128xf32>
      %c0_110 = arith.constant 0 : index
      %c0_111 = arith.constant 0 : index
      %337 = vector.load %arg5[%c0_110, %c0_111] : memref<8x128xf32, #tpu.memory_space<vmem>>, vector<8x128xf32>
      tpu.vector_store %arg5[%c0_110, %c0_111], %336 {strides = array<i32>} : memref<8x128xf32, #tpu.memory_space<vmem>>, vector<8x128xf32>,
    } else {
    }
    %c0 = arith.constant 0 : index
    %c0_1 = arith.constant 0 : index
    %3 = vector.load %arg3[%c0, %c0_1] : memref<1x128xf32, #tpu.memory_space<vmem>>, vector<1x128xf32>
    %4 = vector.shape_cast %3 : vector<1x128xf32> to vector<1x128xf32>
    %5 = vector.broadcast %4 : vector<1x128xf32> to vector<8x128xf32>
    %c0_2 = arith.constant 0 : index
    %c0_3 = arith.constant 0 : index
    %6 = vector.load %arg5[%c0_2, %c0_3] : memref<8x128xf32, #tpu.memory_space<vmem>>, vector<8x128xf32>
    %c0_i32_4 = arith.constant 0 : i32
    %7 = arith.index_cast %c0_i32_4 : i32 to index
    %c0_5 = arith.constant 0 : index
    %c0_6 = arith.constant 0 : index
    %8 = vector.load %arg1[%7, %c0_5, %c0_6] : memref<8x8x384xbf16, #tpu.memory_space<vmem>>, vector<1x8x384xbf16>
    %9 = vector.shape_cast %8 : vector<1x8x384xbf16> to vector<8x384xbf16>
    %10 = arith.truncf %6 : vector<8x128xf32> to vector<8x128xbf16>
    %c0_7 = arith.constant 0 : index
    %c0_8 = arith.constant 0 : index
    %11 = vector.load %arg2[%c0_7, %c0_8] : memref<128x384xbf16, #tpu.memory_space<vmem>>, vector<128x256xbf16>
    %cst = arith.constant dense<0.000000e+00> : vector<8x256xf32>
    %12 = tpu.matmul %10, %11, %cst {dimension_numbers = #tpu.dot_dimension_numbers<[1], [0], [0], [1], [0, 0, 1, 1], [], []>} : vector<8x128xbf16>, vector<128x256xbf16>, vector<8x256xf32> -> vector<8x256xf32>
    %13 = vector.extract_strided_slice %9 {offsets = [0, 0], sizes = [8, 128], strides = [1, 1]} : vector<8x384xbf16> to vector<8x128xbf16>
    %14 = arith.extf %13 : vector<8x128xbf16> to vector<8x128xf32>
    %15 = vector.extract_strided_slice %12 {offsets = [0, 0], sizes = [8, 128], strides = [1, 1]} : vector<8x256xf32> to vector<8x128xf32>
    %16 = arith.addf %14, %15 : vector<8x128xf32>
    %17 = arith.negf %16 : vector<8x128xf32>
    %18 = math.exp %17 : vector<8x128xf32>
    %cst_9 = arith.constant 1.000000e+00 : f32
    %19 = vector.broadcast %cst_9 : f32 to vector<8x128xf32>
    %20 = arith.addf %19, %18 : vector<8x128xf32>
    %21 = arith.divf %19, %20 : vector<8x128xf32>
    %22 = vector.extract_strided_slice %9 {offsets = [0, 128], sizes = [8, 128], strides = [1, 1]} : vector<8x384xbf16> to vector<8x128xbf16>
    %23 = arith.extf %22 : vector<8x128xbf16> to vector<8x128xf32>
    %24 = vector.extract_strided_slice %12 {offsets = [0, 128], sizes = [8, 128], strides = [1, 1]} : vector<8x256xf32> to vector<8x128xf32>
    %25 = arith.addf %23, %24 : vector<8x128xf32>
    %26 = arith.negf %25 : vector<8x128xf32>
    %27 = math.exp %26 : vector<8x128xf32>
    %cst_10 = arith.constant 1.000000e+00 : f32
    %28 = vector.broadcast %cst_10 : f32 to vector<8x128xf32>
    %29 = arith.addf %28, %27 : vector<8x128xf32>
    %30 = arith.divf %28, %29 : vector<8x128xf32>
    %c0_11 = arith.constant 0 : index
    %c256 = arith.constant 256 : index
    %31 = vector.load %arg2[%c0_11, %c256] : memref<128x384xbf16, #tpu.memory_space<vmem>>, vector<128x128xbf16>
    %cst_12 = arith.constant dense<0.000000e+00> : vector<8x128xf32>
    %32 = tpu.matmul %10, %31, %cst_12 {dimension_numbers = #tpu.dot_dimension_numbers<[1], [0], [0], [1], [0, 0, 1, 1], [], []>} : vector<8x128xbf16>, vector<128x128xbf16>, vector<8x128xf32> -> vector<8x128xf32>
    %33 = vector.extract_strided_slice %9 {offsets = [0, 256], sizes = [8, 128], strides = [1, 1]} : vector<8x384xbf16> to vector<8x128xbf16>
    %34 = arith.extf %33 : vector<8x128xbf16> to vector<8x128xf32>
    %35 = arith.addf %32, %5 : vector<8x128xf32>
    %36 = arith.mulf %21, %35 : vector<8x128xf32>
    %37 = arith.addf %34, %36 : vector<8x128xf32>
    %38 = math.tanh %37 : vector<8x128xf32>
    %cst_13 = arith.constant 1.000000e+00 : f32
    %39 = vector.broadcast %cst_13 : f32 to vector<8x128xf32>
    %40 = arith.subf %39, %30 : vector<8x128xf32>
    %41 = arith.mulf %40, %38 : vector<8x128xf32>
    %42 = arith.mulf %30, %6 : vector<8x128xf32>
    %43 = arith.addf %41, %42 : vector<8x128xf32>
    %44 = arith.index_cast %c0_i32_4 : i32 to index
    %c0_14 = arith.constant 0 : index
    %c0_15 = arith.constant 0 : index
    %45 = vector.load %arg4[%44, %c0_14, %c0_15] : memref<8x8x128xf32, #tpu.memory_space<vmem>>, vector<1x8x128xf32>
    %46 = vector.shape_cast %45 : vector<1x8x128xf32> to vector<8x128xf32>
    %47 = vector.shape_cast %43 : vector<8x128xf32> to vector<1x8x128xf32>
    tpu.vector_store %arg4[%44, %c0_14, %c0_15], %47 {strides = array<i32>} : memref<8x8x128xf32, #tpu.memory_space<vmem>>, vector<1x8x128xf32>,
    %c1_i32 = arith.constant 1 : i32
    %48 = arith.index_cast %c1_i32 : i32 to index
    %c0_16 = arith.constant 0 : index
    %c0_17 = arith.constant 0 : index
    %49 = vector.load %arg1[%48, %c0_16, %c0_17] : memref<8x8x384xbf16, #tpu.memory_space<vmem>>, vector<1x8x384xbf16>
    %50 = vector.shape_cast %49 : vector<1x8x384xbf16> to vector<8x384xbf16>
    %51 = arith.truncf %43 : vector<8x128xf32> to vector<8x128xbf16>
    %c0_18 = arith.constant 0 : index
    %c0_19 = arith.constant 0 : index
    %52 = vector.load %arg2[%c0_18, %c0_19] : memref<128x384xbf16, #tpu.memory_space<vmem>>, vector<128x256xbf16>
    %cst_20 = arith.constant dense<0.000000e+00> : vector<8x256xf32>
    %53 = tpu.matmul %51, %52, %cst_20 {dimension_numbers = #tpu.dot_dimension_numbers<[1], [0], [0], [1], [0, 0, 1, 1], [], []>} : vector<8x128xbf16>, vector<128x256xbf16>, vector<8x256xf32> -> vector<8x256xf32>
    %54 = vector.extract_strided_slice %50 {offsets = [0, 0], sizes = [8, 128], strides = [1, 1]} : vector<8x384xbf16> to vector<8x128xbf16>
    %55 = arith.extf %54 : vector<8x128xbf16> to vector<8x128xf32>
    %56 = vector.extract_strided_slice %53 {offsets = [0, 0], sizes = [8, 128], strides = [1, 1]} : vector<8x256xf32> to vector<8x128xf32>
    %57 = arith.addf %55, %56 : vector<8x128xf32>
    %58 = arith.negf %57 : vector<8x128xf32>
    %59 = math.exp %58 : vector<8x128xf32>
    %cst_21 = arith.constant 1.000000e+00 : f32
    %60 = vector.broadcast %cst_21 : f32 to vector<8x128xf32>
    %61 = arith.addf %60, %59 : vector<8x128xf32>
    %62 = arith.divf %60, %61 : vector<8x128xf32>
    %63 = vector.extract_strided_slice %50 {offsets = [0, 128], sizes = [8, 128], strides = [1, 1]} : vector<8x384xbf16> to vector<8x128xbf16>
    %64 = arith.extf %63 : vector<8x128xbf16> to vector<8x128xf32>
    %65 = vector.extract_strided_slice %53 {offsets = [0, 128], sizes = [8, 128], strides = [1, 1]} : vector<8x256xf32> to vector<8x128xf32>
    %66 = arith.addf %64, %65 : vector<8x128xf32>
    %67 = arith.negf %66 : vector<8x128xf32>
    %68 = math.exp %67 : vector<8x128xf32>
    %cst_22 = arith.constant 1.000000e+00 : f32
    %69 = vector.broadcast %cst_22 : f32 to vector<8x128xf32>
    %70 = arith.addf %69, %68 : vector<8x128xf32>
    %71 = arith.divf %69, %70 : vector<8x128xf32>
    %c0_23 = arith.constant 0 : index
    %c256_24 = arith.constant 256 : index
    %72 = vector.load %arg2[%c0_23, %c256_24] : memref<128x384xbf16, #tpu.memory_space<vmem>>, vector<128x128xbf16>
    %cst_25 = arith.constant dense<0.000000e+00> : vector<8x128xf32>
    %73 = tpu.matmul %51, %72, %cst_25 {dimension_numbers = #tpu.dot_dimension_numbers<[1], [0], [0], [1], [0, 0, 1, 1], [], []>} : vector<8x128xbf16>, vector<128x128xbf16>, vector<8x128xf32> -> vector<8x128xf32>
    %74 = vector.extract_strided_slice %50 {offsets = [0, 256], sizes = [8, 128], strides = [1, 1]} : vector<8x384xbf16> to vector<8x128xbf16>
    %75 = arith.extf %74 : vector<8x128xbf16> to vector<8x128xf32>
    %76 = arith.addf %73, %5 : vector<8x128xf32>
    %77 = arith.mulf %62, %76 : vector<8x128xf32>
    %78 = arith.addf %75, %77 : vector<8x128xf32>
    %79 = math.tanh %78 : vector<8x128xf32>
    %cst_26 = arith.constant 1.000000e+00 : f32
    %80 = vector.broadcast %cst_26 : f32 to vector<8x128xf32>
    %81 = arith.subf %80, %71 : vector<8x128xf32>
    %82 = arith.mulf %81, %79 : vector<8x128xf32>
    %83 = arith.mulf %71, %43 : vector<8x128xf32>
    %84 = arith.addf %82, %83 : vector<8x128xf32>
    %85 = arith.index_cast %c1_i32 : i32 to index
    %c0_27 = arith.constant 0 : index
    %c0_28 = arith.constant 0 : index
    %86 = vector.load %arg4[%85, %c0_27, %c0_28] : memref<8x8x128xf32, #tpu.memory_space<vmem>>, vector<1x8x128xf32>
    %87 = vector.shape_cast %86 : vector<1x8x128xf32> to vector<8x128xf32>
    %88 = vector.shape_cast %84 : vector<8x128xf32> to vector<1x8x128xf32>
    tpu.vector_store %arg4[%85, %c0_27, %c0_28], %88 {strides = array<i32>} : memref<8x8x128xf32, #tpu.memory_space<vmem>>, vector<1x8x128xf32>,
    %c2_i32 = arith.constant 2 : i32
    %89 = arith.index_cast %c2_i32 : i32 to index
    %c0_29 = arith.constant 0 : index
    %c0_30 = arith.constant 0 : index
    %90 = vector.load %arg1[%89, %c0_29, %c0_30] : memref<8x8x384xbf16, #tpu.memory_space<vmem>>, vector<1x8x384xbf16>
    %91 = vector.shape_cast %90 : vector<1x8x384xbf16> to vector<8x384xbf16>
    %92 = arith.truncf %84 : vector<8x128xf32> to vector<8x128xbf16>
    %c0_31 = arith.constant 0 : index
    %c0_32 = arith.constant 0 : index
    %93 = vector.load %arg2[%c0_31, %c0_32] : memref<128x384xbf16, #tpu.memory_space<vmem>>, vector<128x256xbf16>
    %cst_33 = arith.constant dense<0.000000e+00> : vector<8x256xf32>
    %94 = tpu.matmul %92, %93, %cst_33 {dimension_numbers = #tpu.dot_dimension_numbers<[1], [0], [0], [1], [0, 0, 1, 1], [], []>} : vector<8x128xbf16>, vector<128x256xbf16>, vector<8x256xf32> -> vector<8x256xf32>
    %95 = vector.extract_strided_slice %91 {offsets = [0, 0], sizes = [8, 128], strides = [1, 1]} : vector<8x384xbf16> to vector<8x128xbf16>
    %96 = arith.extf %95 : vector<8x128xbf16> to vector<8x128xf32>
    %97 = vector.extract_strided_slice %94 {offsets = [0, 0], sizes = [8, 128], strides = [1, 1]} : vector<8x256xf32> to vector<8x128xf32>
    %98 = arith.addf %96, %97 : vector<8x128xf32>
    %99 = arith.negf %98 : vector<8x128xf32>
    %100 = math.exp %99 : vector<8x128xf32>
    %cst_34 = arith.constant 1.000000e+00 : f32
    %101 = vector.broadcast %cst_34 : f32 to vector<8x128xf32>
    %102 = arith.addf %101, %100 : vector<8x128xf32>
    %103 = arith.divf %101, %102 : vector<8x128xf32>
    %104 = vector.extract_strided_slice %91 {offsets = [0, 128], sizes = [8, 128], strides = [1, 1]} : vector<8x384xbf16> to vector<8x128xbf16>
    %105 = arith.extf %104 : vector<8x128xbf16> to vector<8x128xf32>
    %106 = vector.extract_strided_slice %94 {offsets = [0, 128], sizes = [8, 128], strides = [1, 1]} : vector<8x256xf32> to vector<8x128xf32>
    %107 = arith.addf %105, %106 : vector<8x128xf32>
    %108 = arith.negf %107 : vector<8x128xf32>
    %109 = math.exp %108 : vector<8x128xf32>
    %cst_35 = arith.constant 1.000000e+00 : f32
    %110 = vector.broadcast %cst_35 : f32 to vector<8x128xf32>
    %111 = arith.addf %110, %109 : vector<8x128xf32>
    %112 = arith.divf %110, %111 : vector<8x128xf32>
    %c0_36 = arith.constant 0 : index
    %c256_37 = arith.constant 256 : index
    %113 = vector.load %arg2[%c0_36, %c256_37] : memref<128x384xbf16, #tpu.memory_space<vmem>>, vector<128x128xbf16>
    %cst_38 = arith.constant dense<0.000000e+00> : vector<8x128xf32>
    %114 = tpu.matmul %92, %113, %cst_38 {dimension_numbers = #tpu.dot_dimension_numbers<[1], [0], [0], [1], [0, 0, 1, 1], [], []>} : vector<8x128xbf16>, vector<128x128xbf16>, vector<8x128xf32> -> vector<8x128xf32>
    %115 = vector.extract_strided_slice %91 {offsets = [0, 256], sizes = [8, 128], strides = [1, 1]} : vector<8x384xbf16> to vector<8x128xbf16>
    %116 = arith.extf %115 : vector<8x128xbf16> to vector<8x128xf32>
    %117 = arith.addf %114, %5 : vector<8x128xf32>
    %118 = arith.mulf %103, %117 : vector<8x128xf32>
    %119 = arith.addf %116, %118 : vector<8x128xf32>
    %120 = math.tanh %119 : vector<8x128xf32>
    %cst_39 = arith.constant 1.000000e+00 : f32
    %121 = vector.broadcast %cst_39 : f32 to vector<8x128xf32>
    %122 = arith.subf %121, %112 : vector<8x128xf32>
    %123 = arith.mulf %122, %120 : vector<8x128xf32>
    %124 = arith.mulf %112, %84 : vector<8x128xf32>
    %125 = arith.addf %123, %124 : vector<8x128xf32>
    %126 = arith.index_cast %c2_i32 : i32 to index
    %c0_40 = arith.constant 0 : index
    %c0_41 = arith.constant 0 : index
    %127 = vector.load %arg4[%126, %c0_40, %c0_41] : memref<8x8x128xf32, #tpu.memory_space<vmem>>, vector<1x8x128xf32>
    %128 = vector.shape_cast %127 : vector<1x8x128xf32> to vector<8x128xf32>
    %129 = vector.shape_cast %125 : vector<8x128xf32> to vector<1x8x128xf32>
    tpu.vector_store %arg4[%126, %c0_40, %c0_41], %129 {strides = array<i32>} : memref<8x8x128xf32, #tpu.memory_space<vmem>>, vector<1x8x128xf32>,
    %c3_i32 = arith.constant 3 : i32
    %130 = arith.index_cast %c3_i32 : i32 to index
    %c0_42 = arith.constant 0 : index
    %c0_43 = arith.constant 0 : index
    %131 = vector.load %arg1[%130, %c0_42, %c0_43] : memref<8x8x384xbf16, #tpu.memory_space<vmem>>, vector<1x8x384xbf16>
    %132 = vector.shape_cast %131 : vector<1x8x384xbf16> to vector<8x384xbf16>
    %133 = arith.truncf %125 : vector<8x128xf32> to vector<8x128xbf16>
    %c0_44 = arith.constant 0 : index
    %c0_45 = arith.constant 0 : index
    %134 = vector.load %arg2[%c0_44, %c0_45] : memref<128x384xbf16, #tpu.memory_space<vmem>>, vector<128x256xbf16>
    %cst_46 = arith.constant dense<0.000000e+00> : vector<8x256xf32>
    %135 = tpu.matmul %133, %134, %cst_46 {dimension_numbers = #tpu.dot_dimension_numbers<[1], [0], [0], [1], [0, 0, 1, 1], [], []>} : vector<8x128xbf16>, vector<128x256xbf16>, vector<8x256xf32> -> vector<8x256xf32>
    %136 = vector.extract_strided_slice %132 {offsets = [0, 0], sizes = [8, 128], strides = [1, 1]} : vector<8x384xbf16> to vector<8x128xbf16>
    %137 = arith.extf %136 : vector<8x128xbf16> to vector<8x128xf32>
    %138 = vector.extract_strided_slice %135 {offsets = [0, 0], sizes = [8, 128], strides = [1, 1]} : vector<8x256xf32> to vector<8x128xf32>
    %139 = arith.addf %137, %138 : vector<8x128xf32>
    %140 = arith.negf %139 : vector<8x128xf32>
    %141 = math.exp %140 : vector<8x128xf32>
    %cst_47 = arith.constant 1.000000e+00 : f32
    %142 = vector.broadcast %cst_47 : f32 to vector<8x128xf32>
    %143 = arith.addf %142, %141 : vector<8x128xf32>
    %144 = arith.divf %142, %143 : vector<8x128xf32>
    %145 = vector.extract_strided_slice %132 {offsets = [0, 128], sizes = [8, 128], strides = [1, 1]} : vector<8x384xbf16> to vector<8x128xbf16>
    %146 = arith.extf %145 : vector<8x128xbf16> to vector<8x128xf32>
    %147 = vector.extract_strided_slice %135 {offsets = [0, 128], sizes = [8, 128], strides = [1, 1]} : vector<8x256xf32> to vector<8x128xf32>
    %148 = arith.addf %146, %147 : vector<8x128xf32>
    %149 = arith.negf %148 : vector<8x128xf32>
    %150 = math.exp %149 : vector<8x128xf32>
    %cst_48 = arith.constant 1.000000e+00 : f32
    %151 = vector.broadcast %cst_48 : f32 to vector<8x128xf32>
    %152 = arith.addf %151, %150 : vector<8x128xf32>
    %153 = arith.divf %151, %152 : vector<8x128xf32>
    %c0_49 = arith.constant 0 : index
    %c256_50 = arith.constant 256 : index
    %154 = vector.load %arg2[%c0_49, %c256_50] : memref<128x384xbf16, #tpu.memory_space<vmem>>, vector<128x128xbf16>
    %cst_51 = arith.constant dense<0.000000e+00> : vector<8x128xf32>
    %155 = tpu.matmul %133, %154, %cst_51 {dimension_numbers = #tpu.dot_dimension_numbers<[1], [0], [0], [1], [0, 0, 1, 1], [], []>} : vector<8x128xbf16>, vector<128x128xbf16>, vector<8x128xf32> -> vector<8x128xf32>
    %156 = vector.extract_strided_slice %132 {offsets = [0, 256], sizes = [8, 128], strides = [1, 1]} : vector<8x384xbf16> to vector<8x128xbf16>
    %157 = arith.extf %156 : vector<8x128xbf16> to vector<8x128xf32>
    %158 = arith.addf %155, %5 : vector<8x128xf32>
    %159 = arith.mulf %144, %158 : vector<8x128xf32>
    %160 = arith.addf %157, %159 : vector<8x128xf32>
    %161 = math.tanh %160 : vector<8x128xf32>
    %cst_52 = arith.constant 1.000000e+00 : f32
    %162 = vector.broadcast %cst_52 : f32 to vector<8x128xf32>
    %163 = arith.subf %162, %153 : vector<8x128xf32>
    %164 = arith.mulf %163, %161 : vector<8x128xf32>
    %165 = arith.mulf %153, %125 : vector<8x128xf32>
    %166 = arith.addf %164, %165 : vector<8x128xf32>
    %167 = arith.index_cast %c3_i32 : i32 to index
    %c0_53 = arith.constant 0 : index
    %c0_54 = arith.constant 0 : index
    %168 = vector.load %arg4[%167, %c0_53, %c0_54] : memref<8x8x128xf32, #tpu.memory_space<vmem>>, vector<1x8x128xf32>
    %169 = vector.shape_cast %168 : vector<1x8x128xf32> to vector<8x128xf32>
    %170 = vector.shape_cast %166 : vector<8x128xf32> to vector<1x8x128xf32>
    tpu.vector_store %arg4[%167, %c0_53, %c0_54], %170 {strides = array<i32>} : memref<8x8x128xf32, #tpu.memory_space<vmem>>, vector<1x8x128xf32>,
    %c4_i32 = arith.constant 4 : i32
    %171 = arith.index_cast %c4_i32 : i32 to index
    %c0_55 = arith.constant 0 : index
    %c0_56 = arith.constant 0 : index
    %172 = vector.load %arg1[%171, %c0_55, %c0_56] : memref<8x8x384xbf16, #tpu.memory_space<vmem>>, vector<1x8x384xbf16>
    %173 = vector.shape_cast %172 : vector<1x8x384xbf16> to vector<8x384xbf16>
    %174 = arith.truncf %166 : vector<8x128xf32> to vector<8x128xbf16>
    %c0_57 = arith.constant 0 : index
    %c0_58 = arith.constant 0 : index
    %175 = vector.load %arg2[%c0_57, %c0_58] : memref<128x384xbf16, #tpu.memory_space<vmem>>, vector<128x256xbf16>
    %cst_59 = arith.constant dense<0.000000e+00> : vector<8x256xf32>
    %176 = tpu.matmul %174, %175, %cst_59 {dimension_numbers = #tpu.dot_dimension_numbers<[1], [0], [0], [1], [0, 0, 1, 1], [], []>} : vector<8x128xbf16>, vector<128x256xbf16>, vector<8x256xf32> -> vector<8x256xf32>
    %177 = vector.extract_strided_slice %173 {offsets = [0, 0], sizes = [8, 128], strides = [1, 1]} : vector<8x384xbf16> to vector<8x128xbf16>
    %178 = arith.extf %177 : vector<8x128xbf16> to vector<8x128xf32>
    %179 = vector.extract_strided_slice %176 {offsets = [0, 0], sizes = [8, 128], strides = [1, 1]} : vector<8x256xf32> to vector<8x128xf32>
    %180 = arith.addf %178, %179 : vector<8x128xf32>
    %181 = arith.negf %180 : vector<8x128xf32>
    %182 = math.exp %181 : vector<8x128xf32>
    %cst_60 = arith.constant 1.000000e+00 : f32
    %183 = vector.broadcast %cst_60 : f32 to vector<8x128xf32>
    %184 = arith.addf %183, %182 : vector<8x128xf32>
    %185 = arith.divf %183, %184 : vector<8x128xf32>
    %186 = vector.extract_strided_slice %173 {offsets = [0, 128], sizes = [8, 128], strides = [1, 1]} : vector<8x384xbf16> to vector<8x128xbf16>
    %187 = arith.extf %186 : vector<8x128xbf16> to vector<8x128xf32>
    %188 = vector.extract_strided_slice %176 {offsets = [0, 128], sizes = [8, 128], strides = [1, 1]} : vector<8x256xf32> to vector<8x128xf32>
    %189 = arith.addf %187, %188 : vector<8x128xf32>
    %190 = arith.negf %189 : vector<8x128xf32>
    %191 = math.exp %190 : vector<8x128xf32>
    %cst_61 = arith.constant 1.000000e+00 : f32
    %192 = vector.broadcast %cst_61 : f32 to vector<8x128xf32>
    %193 = arith.addf %192, %191 : vector<8x128xf32>
    %194 = arith.divf %192, %193 : vector<8x128xf32>
    %c0_62 = arith.constant 0 : index
    %c256_63 = arith.constant 256 : index
    %195 = vector.load %arg2[%c0_62, %c256_63] : memref<128x384xbf16, #tpu.memory_space<vmem>>, vector<128x128xbf16>
    %cst_64 = arith.constant dense<0.000000e+00> : vector<8x128xf32>
    %196 = tpu.matmul %174, %195, %cst_64 {dimension_numbers = #tpu.dot_dimension_numbers<[1], [0], [0], [1], [0, 0, 1, 1], [], []>} : vector<8x128xbf16>, vector<128x128xbf16>, vector<8x128xf32> -> vector<8x128xf32>
    %197 = vector.extract_strided_slice %173 {offsets = [0, 256], sizes = [8, 128], strides = [1, 1]} : vector<8x384xbf16> to vector<8x128xbf16>
    %198 = arith.extf %197 : vector<8x128xbf16> to vector<8x128xf32>
    %199 = arith.addf %196, %5 : vector<8x128xf32>
    %200 = arith.mulf %185, %199 : vector<8x128xf32>
    %201 = arith.addf %198, %200 : vector<8x128xf32>
    %202 = math.tanh %201 : vector<8x128xf32>
    %cst_65 = arith.constant 1.000000e+00 : f32
    %203 = vector.broadcast %cst_65 : f32 to vector<8x128xf32>
    %204 = arith.subf %203, %194 : vector<8x128xf32>
    %205 = arith.mulf %204, %202 : vector<8x128xf32>
    %206 = arith.mulf %194, %166 : vector<8x128xf32>
    %207 = arith.addf %205, %206 : vector<8x128xf32>
    %208 = arith.index_cast %c4_i32 : i32 to index
    %c0_66 = arith.constant 0 : index
    %c0_67 = arith.constant 0 : index
    %209 = vector.load %arg4[%208, %c0_66, %c0_67] : memref<8x8x128xf32, #tpu.memory_space<vmem>>, vector<1x8x128xf32>
    %210 = vector.shape_cast %209 : vector<1x8x128xf32> to vector<8x128xf32>
    %211 = vector.shape_cast %207 : vector<8x128xf32> to vector<1x8x128xf32>
    tpu.vector_store %arg4[%208, %c0_66, %c0_67], %211 {strides = array<i32>} : memref<8x8x128xf32, #tpu.memory_space<vmem>>, vector<1x8x128xf32>,
    %c5_i32 = arith.constant 5 : i32
    %212 = arith.index_cast %c5_i32 : i32 to index
    %c0_68 = arith.constant 0 : index
    %c0_69 = arith.constant 0 : index
    %213 = vector.load %arg1[%212, %c0_68, %c0_69] : memref<8x8x384xbf16, #tpu.memory_space<vmem>>, vector<1x8x384xbf16>
    %214 = vector.shape_cast %213 : vector<1x8x384xbf16> to vector<8x384xbf16>
    %215 = arith.truncf %207 : vector<8x128xf32> to vector<8x128xbf16>
    %c0_70 = arith.constant 0 : index
    %c0_71 = arith.constant 0 : index
    %216 = vector.load %arg2[%c0_70, %c0_71] : memref<128x384xbf16, #tpu.memory_space<vmem>>, vector<128x256xbf16>
    %cst_72 = arith.constant dense<0.000000e+00> : vector<8x256xf32>
    %217 = tpu.matmul %215, %216, %cst_72 {dimension_numbers = #tpu.dot_dimension_numbers<[1], [0], [0], [1], [0, 0, 1, 1], [], []>} : vector<8x128xbf16>, vector<128x256xbf16>, vector<8x256xf32> -> vector<8x256xf32>
    %218 = vector.extract_strided_slice %214 {offsets = [0, 0], sizes = [8, 128], strides = [1, 1]} : vector<8x384xbf16> to vector<8x128xbf16>
    %219 = arith.extf %218 : vector<8x128xbf16> to vector<8x128xf32>
    %220 = vector.extract_strided_slice %217 {offsets = [0, 0], sizes = [8, 128], strides = [1, 1]} : vector<8x256xf32> to vector<8x128xf32>
    %221 = arith.addf %219, %220 : vector<8x128xf32>
    %222 = arith.negf %221 : vector<8x128xf32>
    %223 = math.exp %222 : vector<8x128xf32>
    %cst_73 = arith.constant 1.000000e+00 : f32
    %224 = vector.broadcast %cst_73 : f32 to vector<8x128xf32>
    %225 = arith.addf %224, %223 : vector<8x128xf32>
    %226 = arith.divf %224, %225 : vector<8x128xf32>
    %227 = vector.extract_strided_slice %214 {offsets = [0, 128], sizes = [8, 128], strides = [1, 1]} : vector<8x384xbf16> to vector<8x128xbf16>
    %228 = arith.extf %227 : vector<8x128xbf16> to vector<8x128xf32>
    %229 = vector.extract_strided_slice %217 {offsets = [0, 128], sizes = [8, 128], strides = [1, 1]} : vector<8x256xf32> to vector<8x128xf32>
    %230 = arith.addf %228, %229 : vector<8x128xf32>
    %231 = arith.negf %230 : vector<8x128xf32>
    %232 = math.exp %231 : vector<8x128xf32>
    %cst_74 = arith.constant 1.000000e+00 : f32
    %233 = vector.broadcast %cst_74 : f32 to vector<8x128xf32>
    %234 = arith.addf %233, %232 : vector<8x128xf32>
    %235 = arith.divf %233, %234 : vector<8x128xf32>
    %c0_75 = arith.constant 0 : index
    %c256_76 = arith.constant 256 : index
    %236 = vector.load %arg2[%c0_75, %c256_76] : memref<128x384xbf16, #tpu.memory_space<vmem>>, vector<128x128xbf16>
    %cst_77 = arith.constant dense<0.000000e+00> : vector<8x128xf32>
    %237 = tpu.matmul %215, %236, %cst_77 {dimension_numbers = #tpu.dot_dimension_numbers<[1], [0], [0], [1], [0, 0, 1, 1], [], []>} : vector<8x128xbf16>, vector<128x128xbf16>, vector<8x128xf32> -> vector<8x128xf32>
    %238 = vector.extract_strided_slice %214 {offsets = [0, 256], sizes = [8, 128], strides = [1, 1]} : vector<8x384xbf16> to vector<8x128xbf16>
    %239 = arith.extf %238 : vector<8x128xbf16> to vector<8x128xf32>
    %240 = arith.addf %237, %5 : vector<8x128xf32>
    %241 = arith.mulf %226, %240 : vector<8x128xf32>
    %242 = arith.addf %239, %241 : vector<8x128xf32>
    %243 = math.tanh %242 : vector<8x128xf32>
    %cst_78 = arith.constant 1.000000e+00 : f32
    %244 = vector.broadcast %cst_78 : f32 to vector<8x128xf32>
    %245 = arith.subf %244, %235 : vector<8x128xf32>
    %246 = arith.mulf %245, %243 : vector<8x128xf32>
    %247 = arith.mulf %235, %207 : vector<8x128xf32>
    %248 = arith.addf %246, %247 : vector<8x128xf32>
    %249 = arith.index_cast %c5_i32 : i32 to index
    %c0_79 = arith.constant 0 : index
    %c0_80 = arith.constant 0 : index
    %250 = vector.load %arg4[%249, %c0_79, %c0_80] : memref<8x8x128xf32, #tpu.memory_space<vmem>>, vector<1x8x128xf32>
    %251 = vector.shape_cast %250 : vector<1x8x128xf32> to vector<8x128xf32>
    %252 = vector.shape_cast %248 : vector<8x128xf32> to vector<1x8x128xf32>
    tpu.vector_store %arg4[%249, %c0_79, %c0_80], %252 {strides = array<i32>} : memref<8x8x128xf32, #tpu.memory_space<vmem>>, vector<1x8x128xf32>,
    %c6_i32 = arith.constant 6 : i32
    %253 = arith.index_cast %c6_i32 : i32 to index
    %c0_81 = arith.constant 0 : index
    %c0_82 = arith.constant 0 : index
    %254 = vector.load %arg1[%253, %c0_81, %c0_82] : memref<8x8x384xbf16, #tpu.memory_space<vmem>>, vector<1x8x384xbf16>
    %255 = vector.shape_cast %254 : vector<1x8x384xbf16> to vector<8x384xbf16>
    %256 = arith.truncf %248 : vector<8x128xf32> to vector<8x128xbf16>
    %c0_83 = arith.constant 0 : index
    %c0_84 = arith.constant 0 : index
    %257 = vector.load %arg2[%c0_83, %c0_84] : memref<128x384xbf16, #tpu.memory_space<vmem>>, vector<128x256xbf16>
    %cst_85 = arith.constant dense<0.000000e+00> : vector<8x256xf32>
    %258 = tpu.matmul %256, %257, %cst_85 {dimension_numbers = #tpu.dot_dimension_numbers<[1], [0], [0], [1], [0, 0, 1, 1], [], []>} : vector<8x128xbf16>, vector<128x256xbf16>, vector<8x256xf32> -> vector<8x256xf32>
    %259 = vector.extract_strided_slice %255 {offsets = [0, 0], sizes = [8, 128], strides = [1, 1]} : vector<8x384xbf16> to vector<8x128xbf16>
    %260 = arith.extf %259 : vector<8x128xbf16> to vector<8x128xf32>
    %261 = vector.extract_strided_slice %258 {offsets = [0, 0], sizes = [8, 128], strides = [1, 1]} : vector<8x256xf32> to vector<8x128xf32>
    %262 = arith.addf %260, %261 : vector<8x128xf32>
    %263 = arith.negf %262 : vector<8x128xf32>
    %264 = math.exp %263 : vector<8x128xf32>
    %cst_86 = arith.constant 1.000000e+00 : f32
    %265 = vector.broadcast %cst_86 : f32 to vector<8x128xf32>
    %266 = arith.addf %265, %264 : vector<8x128xf32>
    %267 = arith.divf %265, %266 : vector<8x128xf32>
    %268 = vector.extract_strided_slice %255 {offsets = [0, 128], sizes = [8, 128], strides = [1, 1]} : vector<8x384xbf16> to vector<8x128xbf16>
    %269 = arith.extf %268 : vector<8x128xbf16> to vector<8x128xf32>
    %270 = vector.extract_strided_slice %258 {offsets = [0, 128], sizes = [8, 128], strides = [1, 1]} : vector<8x256xf32> to vector<8x128xf32>
    %271 = arith.addf %269, %270 : vector<8x128xf32>
    %272 = arith.negf %271 : vector<8x128xf32>
    %273 = math.exp %272 : vector<8x128xf32>
    %cst_87 = arith.constant 1.000000e+00 : f32
    %274 = vector.broadcast %cst_87 : f32 to vector<8x128xf32>
    %275 = arith.addf %274, %273 : vector<8x128xf32>
    %276 = arith.divf %274, %275 : vector<8x128xf32>
    %c0_88 = arith.constant 0 : index
    %c256_89 = arith.constant 256 : index
    %277 = vector.load %arg2[%c0_88, %c256_89] : memref<128x384xbf16, #tpu.memory_space<vmem>>, vector<128x128xbf16>
    %cst_90 = arith.constant dense<0.000000e+00> : vector<8x128xf32>
    %278 = tpu.matmul %256, %277, %cst_90 {dimension_numbers = #tpu.dot_dimension_numbers<[1], [0], [0], [1], [0, 0, 1, 1], [], []>} : vector<8x128xbf16>, vector<128x128xbf16>, vector<8x128xf32> -> vector<8x128xf32>
    %279 = vector.extract_strided_slice %255 {offsets = [0, 256], sizes = [8, 128], strides = [1, 1]} : vector<8x384xbf16> to vector<8x128xbf16>
    %280 = arith.extf %279 : vector<8x128xbf16> to vector<8x128xf32>
    %281 = arith.addf %278, %5 : vector<8x128xf32>
    %282 = arith.mulf %267, %281 : vector<8x128xf32>
    %283 = arith.addf %280, %282 : vector<8x128xf32>
    %284 = math.tanh %283 : vector<8x128xf32>
    %cst_91 = arith.constant 1.000000e+00 : f32
    %285 = vector.broadcast %cst_91 : f32 to vector<8x128xf32>
    %286 = arith.subf %285, %276 : vector<8x128xf32>
    %287 = arith.mulf %286, %284 : vector<8x128xf32>
    %288 = arith.mulf %276, %248 : vector<8x128xf32>
    %289 = arith.addf %287, %288 : vector<8x128xf32>
    %290 = arith.index_cast %c6_i32 : i32 to index
    %c0_92 = arith.constant 0 : index
    %c0_93 = arith.constant 0 : index
    %291 = vector.load %arg4[%290, %c0_92, %c0_93] : memref<8x8x128xf32, #tpu.memory_space<vmem>>, vector<1x8x128xf32>
    %292 = vector.shape_cast %291 : vector<1x8x128xf32> to vector<8x128xf32>
    %293 = vector.shape_cast %289 : vector<8x128xf32> to vector<1x8x128xf32>
    tpu.vector_store %arg4[%290, %c0_92, %c0_93], %293 {strides = array<i32>} : memref<8x8x128xf32, #tpu.memory_space<vmem>>, vector<1x8x128xf32>,
    %c7_i32 = arith.constant 7 : i32
    %294 = arith.index_cast %c7_i32 : i32 to index
    %c0_94 = arith.constant 0 : index
    %c0_95 = arith.constant 0 : index
    %295 = vector.load %arg1[%294, %c0_94, %c0_95] : memref<8x8x384xbf16, #tpu.memory_space<vmem>>, vector<1x8x384xbf16>
    %296 = vector.shape_cast %295 : vector<1x8x384xbf16> to vector<8x384xbf16>
    %297 = arith.truncf %289 : vector<8x128xf32> to vector<8x128xbf16>
    %c0_96 = arith.constant 0 : index
    %c0_97 = arith.constant 0 : index
    %298 = vector.load %arg2[%c0_96, %c0_97] : memref<128x384xbf16, #tpu.memory_space<vmem>>, vector<128x256xbf16>
    %cst_98 = arith.constant dense<0.000000e+00> : vector<8x256xf32>
    %299 = tpu.matmul %297, %298, %cst_98 {dimension_numbers = #tpu.dot_dimension_numbers<[1], [0], [0], [1], [0, 0, 1, 1], [], []>} : vector<8x128xbf16>, vector<128x256xbf16>, vector<8x256xf32> -> vector<8x256xf32>
    %300 = vector.extract_strided_slice %296 {offsets = [0, 0], sizes = [8, 128], strides = [1, 1]} : vector<8x384xbf16> to vector<8x128xbf16>
    %301 = arith.extf %300 : vector<8x128xbf16> to vector<8x128xf32>
    %302 = vector.extract_strided_slice %299 {offsets = [0, 0], sizes = [8, 128], strides = [1, 1]} : vector<8x256xf32> to vector<8x128xf32>
    %303 = arith.addf %301, %302 : vector<8x128xf32>
    %304 = arith.negf %303 : vector<8x128xf32>
    %305 = math.exp %304 : vector<8x128xf32>
    %cst_99 = arith.constant 1.000000e+00 : f32
    %306 = vector.broadcast %cst_99 : f32 to vector<8x128xf32>
    %307 = arith.addf %306, %305 : vector<8x128xf32>
    %308 = arith.divf %306, %307 : vector<8x128xf32>
    %309 = vector.extract_strided_slice %296 {offsets = [0, 128], sizes = [8, 128], strides = [1, 1]} : vector<8x384xbf16> to vector<8x128xbf16>
    %310 = arith.extf %309 : vector<8x128xbf16> to vector<8x128xf32>
    %311 = vector.extract_strided_slice %299 {offsets = [0, 128], sizes = [8, 128], strides = [1, 1]} : vector<8x256xf32> to vector<8x128xf32>
    %312 = arith.addf %310, %311 : vector<8x128xf32>
    %313 = arith.negf %312 : vector<8x128xf32>
    %314 = math.exp %313 : vector<8x128xf32>
    %cst_100 = arith.constant 1.000000e+00 : f32
    %315 = vector.broadcast %cst_100 : f32 to vector<8x128xf32>
    %316 = arith.addf %315, %314 : vector<8x128xf32>
    %317 = arith.divf %315, %316 : vector<8x128xf32>
    %c0_101 = arith.constant 0 : index
    %c256_102 = arith.constant 256 : index
    %318 = vector.load %arg2[%c0_101, %c256_102] : memref<128x384xbf16, #tpu.memory_space<vmem>>, vector<128x128xbf16>
    %cst_103 = arith.constant dense<0.000000e+00> : vector<8x128xf32>
    %319 = tpu.matmul %297, %318, %cst_103 {dimension_numbers = #tpu.dot_dimension_numbers<[1], [0], [0], [1], [0, 0, 1, 1], [], []>} : vector<8x128xbf16>, vector<128x128xbf16>, vector<8x128xf32> -> vector<8x128xf32>
    %320 = vector.extract_strided_slice %296 {offsets = [0, 256], sizes = [8, 128], strides = [1, 1]} : vector<8x384xbf16> to vector<8x128xbf16>
    %321 = arith.extf %320 : vector<8x128xbf16> to vector<8x128xf32>
    %322 = arith.addf %319, %5 : vector<8x128xf32>
    %323 = arith.mulf %308, %322 : vector<8x128xf32>
    %324 = arith.addf %321, %323 : vector<8x128xf32>
    %325 = math.tanh %324 : vector<8x128xf32>
    %cst_104 = arith.constant 1.000000e+00 : f32
    %326 = vector.broadcast %cst_104 : f32 to vector<8x128xf32>
    %327 = arith.subf %326, %317 : vector<8x128xf32>
    %328 = arith.mulf %327, %325 : vector<8x128xf32>
    %329 = arith.mulf %317, %289 : vector<8x128xf32>
    %330 = arith.addf %328, %329 : vector<8x128xf32>
    %331 = arith.index_cast %c7_i32 : i32 to index
    %c0_105 = arith.constant 0 : index
    %c0_106 = arith.constant 0 : index
    %332 = vector.load %arg4[%331, %c0_105, %c0_106] : memref<8x8x128xf32, #tpu.memory_space<vmem>>, vector<1x8x128xf32>
    %333 = vector.shape_cast %332 : vector<1x8x128xf32> to vector<8x128xf32>
    %334 = vector.shape_cast %330 : vector<8x128xf32> to vector<1x8x128xf32>
    tpu.vector_store %arg4[%331, %c0_105, %c0_106], %334 {strides = array<i32>} : memref<8x8x128xf32, #tpu.memory_space<vmem>>, vector<1x8x128xf32>,
    %c8_i32 = arith.constant 8 : i32
    %c0_107 = arith.constant 0 : index
    %c0_108 = arith.constant 0 : index
    %335 = vector.load %arg5[%c0_107, %c0_108] : memref<8x128xf32, #tpu.memory_space<vmem>>, vector<8x128xf32>
    tpu.vector_store %arg5[%c0_107, %c0_108], %330 {strides = array<i32>} : memref<8x128xf32, #tpu.memory_space<vmem>>, vector<8x128xf32>,
    return
  }
  func.func @transform_0(%arg0: i32) -> (i32, i32, i32) {
    %c0_i32 = arith.constant 0 : i32
    %c0_i32_0 = arith.constant 0 : i32
    %c0_i32_1 = arith.constant 0 : i32
    return %arg0, %c0_i32, %c0_i32_0 : i32, i32, i32
  }
  func.func @transform_1(%arg0: i32) -> (i32, i32) {
    %c0_i32 = arith.constant 0 : i32
    %c0_i32_0 = arith.constant 0 : i32
    %c0_i32_1 = arith.constant 0 : i32
    return %c0_i32, %c0_i32_0 : i32, i32
  }
  func.func @transform_2(%arg0: i32) -> (i32, i32) {
    %c0_i32 = arith.constant 0 : i32
    %c0_i32_0 = arith.constant 0 : i32
    %c0_i32_1 = arith.constant 0 : i32
    return %c0_i32, %c0_i32_0 : i32, i32
  }
  func.func @transform_3(%arg0: i32) -> (i32, i32, i32) {
    %c0_i32 = arith.constant 0 : i32
    %c0_i32_0 = arith.constant 0 : i32
    %c0_i32_1 = arith.constant 0 : i32
    return %arg0, %c0_i32, %c0_i32_0 : i32, i32, i32
  }
}

</mosaic_0001>

<bundles_post_ra>
// kernel: temporal_gru_forward.1
= control target key start
LH: loop header
LB: loop body
LE: loop exit
PB: predicated region body
PF: predicated region fallthrough
CT: control target
= control target key end

     0   :  { %v2882_v1 = vmov 0.0   ;;  %v2883_v2 = vmov 0   ;;  %vm2884_vm0 = vmmov 0   ;;  %v2885_v28 = vmov 0.0|0.0   ;;  %s3599_s1 = inlined_call_operand.vmem [shape: bf16[128,384], index: 1, kind: input, shape index: {}]   ;;  %s3600_s0 = inlined_call_operand.vmem [shape: bf16[8,8,384], index: 0, kind: input, shape index: {}]   ;;  %s3601_s2 = inlined_call_operand.vmem [shape: f32[1,128], index: 2, kind: input, shape index: {}]   ;;  %s3602_s3 = inlined_call_operand.vmem [shape: f32[8,8,128], index: 3, kind: output, shape index: {}]  }
   0x1   :  { %v2909_v0 = vld [vmem:[%s3599_s1 + $0x4] ss:$12 sps:$4 sm:$0xff]   ;;  %2525 = vmatprep.subr.bf16.mxu1 %v2882_v1  ;;  %159 = vmatprep.mubr.bf16.mxu0 %v2883_v2  ;;  %v2916_v3 = vld [vmem:[%s3599_s1] ss:$12 sps:$4 sm:$0xff]   ;;  %v33_v4 = vld [vmem:[%s3599_s1 + $0x18] sm:$0xff] }
   0x2   :  { %v34_v5 = vld [vmem:[%s3599_s1 + $0x24] sm:$0xff]  ;;  %2541 = vmatprep.mubr.msk.bf16.mxu1 %vm2884_vm0, %v2882_v1  ;;  %127 = vmatprep.subr.bf16.mxu0 %v2909_v0  ;;  %v2936_v8 = vld [vmem:[%s3599_s1 + $0x34] ss:$12 sps:$4 sm:$0xff]   ;;  %v2942_v9 = vld [vmem:[%s3599_s1 + $0x30] ss:$12 sps:$4 sm:$0xff]  }
   0x3   :  { %v2927_v6 = vcombine.high %v33_v4, %v34_v5  ;;  %128 = vmatpush1.bf16.msra.mxu0 %v2916_v3  ;;  %v2930_v7 = vcombine.low %v33_v4, %v34_v5  ;;  %v2948_v10 = vld [vmem:[%s3599_s1 + $0x4c] ss:$12 sps:$4 sm:$0xff]   ;;  %v2708_v11 = vld [vmem:[%s3599_s1 + $0x8] ss:$12 sps:$4 sm:$0xff]   ;;  %v2966_v14 = vld [vmem:[%s3599_s1 + $0x64] ss:$12 sps:$4 sm:$0xff]  }
   0x4   :  { %v2957_v12 = vld [vmem:[%s3599_s1 + $0x48] ss:$12 sps:$4 sm:$0xff]   ;;  %2526 = vmatpush3.bf16.msra.mxu1 %v2708_v11  ;;  %v2712_v13 = vld [vmem:[%s3599_s1 + $0x20] ss:$12 sps:$4 sm:$0xff]   ;;  %v2714_v16 = vld [vmem:[%s3599_s1 + $0x38] ss:$12 sps:$4 sm:$0xff]  }
   0x5   :  { %129 = vmatprep.subr.bf16.mxu0 %v2927_v6  ;;  %2527 = vmatprep.subr.bf16.mxu1 %v2882_v1  ;;  %v2972_v15 = vld [vmem:[%s3599_s1 + $0x60] ss:$12 sps:$4 sm:$0xff]   ;;  %v2982_v17 = vld [vmem:[%s3599_s1 + $0x7c] ss:$12 sps:$4 sm:$0xff]   ;;  %v2988_v18 = vld [vmem:[%s3599_s1 + $0x78] ss:$12 sps:$4 sm:$0xff]  }
   0x6   :  { %v2993_v19 = vld [vmem:[%s3599_s1 + $0x94] ss:$12 sps:$4 sm:$0xff]   ;;  %v2715_v20 = vld [vmem:[%s3599_s1 + $0x50] ss:$12 sps:$4 sm:$0xff]   ;;  %v3012_v23 = vld [vmem:[%s3599_s1 + $0xac] ss:$12 sps:$4 sm:$0xff]  }
   0x7   :  { %130 = vmatpush1.bf16.msra.mxu0 %v2930_v7  ;;  %v3004_v21 = vld [vmem:[%s3599_s1 + $0x90] ss:$12 sps:$4 sm:$0xff]   ;;  %v2716_v22 = vld [vmem:[%s3599_s1 + $0x68] ss:$12 sps:$4 sm:$0xff]   ;;  %v2717_v25 = vld [vmem:[%s3599_s1 + $0x80] ss:$12 sps:$4 sm:$0xff]  }
   0x8   :  { %131 = vmatprep.subr.bf16.mxu0 %v2936_v8  ;;  %2528 = vmatpush3.bf16.msra.mxu1 %v2712_v13  ;;  %v3020_v24 = vld [vmem:[%s3599_s1 + $0xa8] ss:$12 sps:$4 sm:$0xff]   ;;  %v2718_v26 = vld [vmem:[%s3599_s1 + $0x98] ss:$12 sps:$4 sm:$0xff]   ;;  %v2719_v27 = vld [vmem:[%s3599_s1 + $0xb0] ss:$12 sps:$4 sm:$0xff]  }
   0x9   :  { %2529 = vmatprep.subr.bf16.mxu1 %v2882_v1  ;;  %v2720_v29 = vld [vmem:[%s3599_s1 + $0x8] ss:$12 sps:$4 sm:$0xff]   ;;  %v2721_v30 = vld [vmem:[%s3599_s1 + $0x20] ss:$12 sps:$4 sm:$0xff]   ;;  %v2722_v31 = vld [vmem:[%s3599_s1 + $0x38] ss:$12 sps:$4 sm:$0xff]  }
   0xa   :  { %v2723_v32 = vld [vmem:[%s3599_s1 + $0x50] ss:$12 sps:$4 sm:$0xff]   ;;  %v2724_v33 = vld [vmem:[%s3599_s1 + $0x68] ss:$12 sps:$4 sm:$0xff]   ;;  %v2725_v34 = vld [vmem:[%s3599_s1 + $0x80] ss:$12 sps:$4 sm:$0xff]  }
   0xb   :  { %132 = vmatpush1.bf16.msra.mxu0 %v2942_v9  ;;  %v2726_v35 = vld [vmem:[%s3599_s1 + $0x98] ss:$12 sps:$4 sm:$0xff]   ;;  %v2727_v36 = vld [vmem:[%s3599_s1 + $0xb0] ss:$12 sps:$4 sm:$0xff]   ;;  %v3096_v56 = vld [vmem:[%s3601_s2] ss:$0 sm:$0xff] }
   0xc   :  { %133 = vmatprep.subr.bf16.mxu0 %v2948_v10  ;;  %2530 = vmatpush3.bf16.msra.mxu1 %v2714_v16  ;;  %v28_v37 = vld [vmem:[%s3600_s0] sm:$0xff]  ;;  %v29_v57 = vld [vmem:[%s3600_s0 + $0x8] sm:$0xf] }
   0xd   :  { %2531 = vmatprep.subr.bf16.mxu1 %v2882_v1  ;;  %v177_v38 = vrot.slane %v28_v37, 4  ;;  %v168_v39 = vunpack.c.l.bf16 %v28_v37  ;;  %v203_v60 = vunpack.c.l.bf16 %v29_v57 }
   0xf   :  { %134 = vmatpush1.bf16.msra.mxu0 %v2957_v12  ;;  %v179_v41 = vunpack.c.l.bf16 %v177_v38 }
  0x10   :  { %135 = vmatprep.subr.bf16.mxu0 %v2966_v14  ;;  %2532 = vmatpush3.bf16.msra.mxu1 %v2715_v20 }
  0x11   :  { %2533 = vmatprep.subr.bf16.mxu1 %v2882_v1 }
  0x13   :  { %136 = vmatpush1.bf16.msra.mxu0 %v2972_v15 }
  0x14   :  { %137 = vmatprep.subr.bf16.mxu0 %v2982_v17  ;;  %2534 = vmatpush3.bf16.msra.mxu1 %v2716_v22 }
  0x15   :  { %2535 = vmatprep.subr.bf16.mxu1 %v2882_v1 }
  0x17   :  { %138 = vmatpush1.bf16.msra.mxu0 %v2988_v18 }
  0x18   :  { %139 = vmatprep.subr.bf16.mxu0 %v2993_v19  ;;  %2536 = vmatpush3.bf16.msra.mxu1 %v2717_v25  ;;  %v2728_v25 = vld [vmem:[%s3599_s1 + $0x8] ss:$12 sps:$4 sm:$0xff]  }
  0x19   :  { %2537 = vmatprep.subr.bf16.mxu1 %v2882_v1 }
  0x1b   :  { %140 = vmatpush1.bf16.msra.mxu0 %v3004_v21 }
  0x1c   :  { %141 = vmatprep.subr.bf16.mxu0 %v3012_v23  ;;  %2538 = vmatpush3.bf16.msra.mxu1 %v2718_v26  ;;  %v2729_v26 = vld [vmem:[%s3599_s1 + $0x20] ss:$12 sps:$4 sm:$0xff]  }
  0x1d   :  { %2539 = vmatprep.subr.bf16.mxu1 %v2882_v1 }
  0x1f   :  { %142 = vmatpush1.bf16.msra.mxu0 %v3020_v24 }
  0x20   :  { %400 = vmatprep.subr.bf16.mxu0 %v2909_v0  ;;  %2540 = vmatpush3.bf16.msra.mxu1 %v2719_v27  ;;  %v2730_v27 = vld [vmem:[%s3599_s1 + $0x38] ss:$12 sps:$4 sm:$0xff]  }
  0x21   :  { %2545 = vmatprep.subr.bf16.mxu1 %v2882_v1 }
  0x22   :  { %160 = vmatmul.mubr.bf16.vlgmr.msra.gmra.mrb[0].mxu0 %v2885_v28 }
  0x23   :  { %401 = vmatpush1.bf16.msra.mxu0 %v2916_v3  ;;  %432 = vmatprep.mubr.bf16.mxu0 %v2883_v2 }
  0x24   :  { %402 = vmatprep.subr.bf16.mxu0 %v2927_v6  ;;  %2542 = vmatmul.mubr.bf16.vlgmr.msra.gmra.mrb[0].mxu1 %v2885_v28  ;;  %v2731_v28 = vld [vmem:[%s3599_s1 + $0x50] ss:$12 sps:$4 sm:$0xff]  }
  0x25   :  { %2561 = vmatprep.mubr.msk.bf16.mxu1 %vm2884_vm0, %v2882_v1  ;;  %2546 = vmatpush3.bf16.msra.mxu1 %v2720_v29  ;;  %v2732_v29 = vld [vmem:[%s3599_s1 + $0x68] ss:$12 sps:$4 sm:$0xff]  }
  0x26   :  { %2547 = vmatprep.subr.bf16.mxu1 %v2882_v1 }
  0x27   :  { %403 = vmatpush1.bf16.msra.mxu0 %v2930_v7 }
  0x28   :  { %404 = vmatprep.subr.bf16.mxu0 %v2936_v8 }
  0x29   :  { %2548 = vmatpush3.bf16.msra.mxu1 %v2721_v30  ;;  %v2733_v30 = vld [vmem:[%s3599_s1 + $0x80] ss:$12 sps:$4 sm:$0xff]  }
  0x2a   :  { %2549 = vmatprep.subr.bf16.mxu1 %v2882_v1 }
  0x2b   :  { %405 = vmatpush1.bf16.msra.mxu0 %v2942_v9 }
  0x2c   :  { %406 = vmatprep.subr.bf16.mxu0 %v2948_v10 }
  0x2d   :  { %2550 = vmatpush3.bf16.msra.mxu1 %v2722_v31  ;;  %v2734_v31 = vld [vmem:[%s3599_s1 + $0x98] ss:$12 sps:$4 sm:$0xff]  }
  0x2e   :  { %2551 = vmatprep.subr.bf16.mxu1 %v2882_v1 }
  0x2f   :  { %407 = vmatpush1.bf16.msra.mxu0 %v2957_v12 }
  0x30   :  { %408 = vmatprep.subr.bf16.mxu0 %v2966_v14 }
  0x31   :  { %2552 = vmatpush3.bf16.msra.mxu1 %v2723_v32  ;;  %v2735_v32 = vld [vmem:[%s3599_s1 + $0xb0] ss:$12 sps:$4 sm:$0xff]  }
  0x32   :  { %2553 = vmatprep.subr.bf16.mxu1 %v2882_v1 }
  0x33   :  { %409 = vmatpush1.bf16.msra.mxu0 %v2972_v15 }
  0x34   :  { %410 = vmatprep.subr.bf16.mxu0 %v2982_v17 }
  0x35   :  { %2554 = vmatpush3.bf16.msra.mxu1 %v2724_v33  ;;  %v2250_v33 = vld [vmem:[%s3600_s0 + $0xc] sm:$0xff] }
  0x36   :  { %2555 = vmatprep.subr.bf16.mxu1 %v2882_v1 }
  0x37   :  { %411 = vmatpush1.bf16.msra.mxu0 %v2988_v18 }
  0x38   :  { %412 = vmatprep.subr.bf16.mxu0 %v2993_v19 }
  0x39   :  { %2556 = vmatpush3.bf16.msra.mxu1 %v2725_v34  ;;  %v450_v34 = vrot.slane %v2250_v33, 4 }
  0x3a   :  { %2557 = vmatprep.subr.bf16.mxu1 %v2882_v1 }
  0x3b   :  { %413 = vmatpush1.bf16.msra.mxu0 %v3004_v21  ;;  %v452_v38 = vunpack.c.l.bf16 %v450_v34 }
  0x3c   :  { %414 = vmatprep.subr.bf16.mxu0 %v3012_v23 }
  0x3d   :  { %2558 = vmatpush3.bf16.msra.mxu1 %v2726_v35  ;;  %v441_v35 = vunpack.c.l.bf16 %v2250_v33 }
  0x3e   :  { %2559 = vmatprep.subr.bf16.mxu1 %v2882_v1 }
  0x3f   :  { %415 = vmatpush1.bf16.msra.mxu0 %v3020_v24 }
  0x40   :  { %674 = vmatprep.subr.bf16.mxu0 %v2909_v0 }
  0x41   :  { %2560 = vmatpush3.bf16.msra.mxu1 %v2727_v36 }
  0x42   :  { %2565 = vmatprep.subr.bf16.mxu1 %v2882_v1 }
  0xf5   :  { %v161_v40 = vpop.f32.mrb[0].mxu0 }
  0xf6   :  { %v169_v42 = vadd.f32 %v168_v39, %v161_v40  ;;  %v163_v43 = vpop.f32.mrb[1].mxu0 }
  0xf7   :  { %v165_v44 = vpop.f32.mrb[2].mxu0  ;;  %v180_v47 = vadd.f32 %v179_v41, %v163_v43  ;;  %v286_v49 = vpop.f32.mrb[0].mxu1 }
  0xf8   :  { %v2240_v45 = vmul.f32 -1.442695, %v169_v42  ;;  %v166_v46 = vpop.f32.mrb[3].mxu0  ;;  %v2543_v50 = vpop.f32.mrb[1].mxu1  ;;  %v287_v59 = vadd.f32 %v3096_v56, %v286_v49 }
  0xf9   :  { %v2241_v48 = vmul.f32 -1.442695, %v180_v47  ;;  %v289_v51 = vpop.f32.mrb[2].mxu1 }
  0xfa   :  { %2801 = vpow2.f32 %v2240_v45  ;;  %v2544_v52 = vpop.f32.mrb[3].mxu1 }
  0xfb   :  { %2803 = vpow2.f32 %v2241_v48  ;;  %v3167_v52 = vld [vmem:[%s3600_s0 + $0x14] ss:$12 sps:$4 sm:$0xff]  }
 0x104   :  { %v2802_v53 = vpop.eup %2801 }
 0x105   :  { %v173_v54 = vadd.f32 1.0, %v2802_v53  ;;  %v2804_v55 = vpop.eup %2803 }
 0x106   :  { %v184_v58 = vadd.f32 1.0, %v2804_v55 }
 0x107   :  { %2805 = vrcp.f32 %v173_v54  ;;  %v476_v54 = vunpack.c.l.bf16 %v3167_v52 }
 0x108   :  { %2807 = vrcp.f32 %v184_v58 }
 0x111   :  { %v2806_v61 = vpop.eup %2805 }
 0x112   :  { %v292_v62 = vmul.f32 %v2806_v61, %v287_v59  ;;  %v2808_v4 = vpop.eup %2807 }
 0x113   :  { %v295_v5 = vsub.f32 1.0, %v2808_v4  ;;  %v297_v16 = vmul.f32 0.0, %v2808_v4 }
 0x114   :  { %v293_v63 = vadd.f32 %v292_v62, %v203_v60 }
 0x116   :  { %2809 = vtanh.f32 %v293_v63 }
 0x120   :  { %v2810_v11 = vpop.eup %2809 }
 0x121   :  { %v296_v13 = vmul.f32 %v2810_v11, %v295_v5 }
 0x123   :  { %v3102_v20 = vadd.f32 %v297_v16, %v296_v13 }
 0x125   :  { %299 = vst [vmem:[%s3602_s3] sm:$0xff] %v3102_v20  ;;  %v303_v22 = vpack.c.bf16 %v3102_v20, %v3102_v20 }
 0x127   :  { %433 = vmatmul.mubr.bf16.vlgmr.msra.gmra.mrb[4].mxu0 %v303_v22  ;;  %2562 = vmatmul.mubr.bf16.vlgmr.msra.gmra.mrb[4].mxu1 %v303_v22 }
 0x128   :  { %675 = vmatpush1.bf16.msra.mxu0 %v2916_v3  ;;  %706 = vmatprep.mubr.bf16.mxu0 %v2883_v2 }
 0x129   :  { %676 = vmatprep.subr.bf16.mxu0 %v2927_v6  ;;  %2581 = vmatprep.mubr.msk.bf16.mxu1 %vm2884_vm0, %v2882_v1 }
 0x12a   :  { %2566 = vmatpush3.bf16.msra.mxu1 %v2728_v25 }
 0x12b   :  { %2567 = vmatprep.subr.bf16.mxu1 %v2882_v1 }
 0x12c   :  { %677 = vmatpush1.bf16.msra.mxu0 %v2930_v7 }
 0x12d   :  { %678 = vmatprep.subr.bf16.mxu0 %v2936_v8 }
 0x12e   :  { %2568 = vmatpush3.bf16.msra.mxu1 %v2729_v26 }
 0x12f   :  { %2569 = vmatprep.subr.bf16.mxu1 %v2882_v1 }
 0x130   :  { %679 = vmatpush1.bf16.msra.mxu0 %v2942_v9 }
 0x131   :  { %680 = vmatprep.subr.bf16.mxu0 %v2948_v10 }
 0x132   :  { %2570 = vmatpush3.bf16.msra.mxu1 %v2730_v27 }
 0x133   :  { %2571 = vmatprep.subr.bf16.mxu1 %v2882_v1 }
 0x134   :  { %681 = vmatpush1.bf16.msra.mxu0 %v2957_v12 }
 0x135   :  { %682 = vmatprep.subr.bf16.mxu0 %v2966_v14 }
 0x136   :  { %2572 = vmatpush3.bf16.msra.mxu1 %v2731_v28 }
 0x137   :  { %2573 = vmatprep.subr.bf16.mxu1 %v2882_v1 }
 0x138   :  { %683 = vmatpush1.bf16.msra.mxu0 %v2972_v15 }
 0x139   :  { %684 = vmatprep.subr.bf16.mxu0 %v2982_v17 }
 0x13a   :  { %2574 = vmatpush3.bf16.msra.mxu1 %v2732_v29 }
 0x13b   :  { %2575 = vmatprep.subr.bf16.mxu1 %v2882_v1 }
 0x13c   :  { %685 = vmatpush1.bf16.msra.mxu0 %v2988_v18 }
 0x13d   :  { %686 = vmatprep.subr.bf16.mxu0 %v2993_v19 }
 0x13e   :  { %2576 = vmatpush3.bf16.msra.mxu1 %v2733_v30 }
 0x13f   :  { %2577 = vmatprep.subr.bf16.mxu1 %v2882_v1 }
 0x140   :  { %687 = vmatpush1.bf16.msra.mxu0 %v3004_v21 }
 0x141   :  { %688 = vmatprep.subr.bf16.mxu0 %v3012_v23 }
 0x142   :  { %2578 = vmatpush3.bf16.msra.mxu1 %v2734_v31 }
 0x143   :  { %2579 = vmatprep.subr.bf16.mxu1 %v2882_v1 }
 0x144   :  { %689 = vmatpush1.bf16.msra.mxu0 %v3020_v24 }
 0x145   :  { %948 = vmatprep.subr.bf16.mxu0 %v2909_v0 }
 0x146   :  { %2580 = vmatpush3.bf16.msra.mxu1 %v2735_v32 }
 0x147   :  { %2585 = vmatprep.subr.bf16.mxu1 %v2882_v1 }
 0x1fa   :  { %v434_v36 = vpop.f32.mrb[4].mxu0  ;;  %v559_v37 = vpop.f32.mrb[4].mxu1 }
 0x1fb   :  { %v442_v39 = vadd.f32 %v441_v35, %v434_v36  ;;  %v436_v40 = vpop.f32.mrb[5].mxu0  ;;  %v2563_v41 = vpop.f32.mrb[5].mxu1  ;;  %v560_v55 = vadd.f32 %v3096_v56, %v559_v37  ;;  %v750_v36 = vunpack.c.h.bf16 %v3167_v52  ;;  %v2754_v52 = vld [vmem:[%s3599_s1 + $0x50] ss:$12 sps:$4 sm:$0xff]  }
 0x1fc   :  { %v438_v42 = vpop.f32.mrb[6].mxu0  ;;  %v562_v43 = vpop.f32.mrb[6].mxu1  ;;  %v453_v47 = vadd.f32 %v452_v38, %v436_v40 }
 0x1fd   :  { %v2268_v44 = vmul.f32 -1.442695, %v442_v39  ;;  %v439_v45 = vpop.f32.mrb[7].mxu0  ;;  %v2564_v46 = vpop.f32.mrb[7].mxu1 }
 0x1fe   :  { %v2269_v48 = vmul.f32 -1.442695, %v453_v47 }
 0x1ff   :  { %2811 = vpow2.f32 %v2268_v44 }
 0x200   :  { %2813 = vpow2.f32 %v2269_v48  ;;  %v2744_v48 = vld [vmem:[%s3599_s1 + $0x8] ss:$12 sps:$4 sm:$0xff]  }
 0x209   :  { %v2812_v49 = vpop.eup %2811 }
 0x20a   :  { %v446_v50 = vadd.f32 1.0, %v2812_v49  ;;  %v2814_v51 = vpop.eup %2813  ;;  %v2746_v49 = vld [vmem:[%s3599_s1 + $0x20] ss:$12 sps:$4 sm:$0xff]  }
 0x20b   :  { %v457_v53 = vadd.f32 1.0, %v2814_v51  ;;  %v2750_v51 = vld [vmem:[%s3599_s1 + $0x38] ss:$12 sps:$4 sm:$0xff]  }
 0x20c   :  { %2815 = vrcp.f32 %v446_v50  ;;  %v3267_v50 = vld [vmem:[%s3599_s1 + $0x30] ss:$12 sps:$4 sm:$0xff]  }
 0x20d   :  { %2817 = vrcp.f32 %v457_v53  ;;  %v3293_v53 = vld [vmem:[%s3599_s1 + $0x64] ss:$12 sps:$4 sm:$0xff]  }
 0x216   :  { %v2816_v57 = vpop.eup %2815 }
 0x217   :  { %v565_v58 = vmul.f32 %v2816_v57, %v560_v55  ;;  %v2818_v60 = vpop.eup %2817  ;;  %v2758_v55 = vld [vmem:[%s3599_s1 + $0x68] ss:$12 sps:$4 sm:$0xff]  }
 0x218   :  { %v568_v61 = vsub.f32 1.0, %v2818_v60  ;;  %v570_v4 = vmul.f32 %v2818_v60, %v3102_v20  ;;  %v3308_v57 = vld [vmem:[%s3599_s1 + $0x7c] ss:$12 sps:$4 sm:$0xff]   ;;  %v3324_v60 = vld [vmem:[%s3599_s1 + $0x94] ss:$12 sps:$4 sm:$0xff]  }
 0x219   :  { %v566_v59 = vadd.f32 %v565_v58, %v476_v54  ;;  %v3299_v54 = vld [vmem:[%s3599_s1 + $0x60] ss:$12 sps:$4 sm:$0xff]   ;;  %v3314_v58 = vld [vmem:[%s3599_s1 + $0x78] ss:$12 sps:$4 sm:$0xff]  }
 0x21b   :  { %2819 = vtanh.f32 %v566_v59  ;;  %v2762_v59 = vld [vmem:[%s3599_s1 + $0x80] ss:$12 sps:$4 sm:$0xff]  }
 0x225   :  { %v2820_v62 = vpop.eup %2819 }
 0x226   :  { %v569_v63 = vmul.f32 %v2820_v62, %v568_v61  ;;  %v3330_v61 = vld [vmem:[%s3599_s1 + $0x90] ss:$12 sps:$4 sm:$0xff]   ;;  %v2766_v62 = vld [vmem:[%s3599_s1 + $0x98] ss:$12 sps:$4 sm:$0xff]  }
 0x228   :  { %v3172_v5 = vadd.f32 %v570_v4, %v569_v63  ;;  %v3340_v63 = vld [vmem:[%s3599_s1 + $0xac] ss:$12 sps:$4 sm:$0xff]   ;;  %v3346_v4 = vld [vmem:[%s3599_s1 + $0xa8] ss:$12 sps:$4 sm:$0xff]  }
 0x22a   :  { %2278 = vst [vmem:[%s3602_s3 + $0x8] sm:$0xff] %v3172_v5  ;;  %v577_v11 = vpack.c.bf16 %v3172_v5, %v3172_v5 }
 0x22c   :  { %707 = vmatmul.mubr.bf16.vlgmr.msra.gmra.mrb[8].mxu0 %v577_v11  ;;  %2582 = vmatmul.mubr.bf16.vlgmr.msra.gmra.mrb[8].mxu1 %v577_v11  ;;  %v2308_v11 = vld [vmem:[%s3600_s0 + $0x24] sm:$0xff] }
 0x22d   :  { %949 = vmatpush1.bf16.msra.mxu0 %v2916_v3  ;;  %980 = vmatprep.mubr.bf16.mxu0 %v2883_v2 }
 0x22e   :  { %950 = vmatprep.subr.bf16.mxu0 %v2927_v6  ;;  %2601 = vmatprep.mubr.msk.bf16.mxu1 %vm2884_vm0, %v2882_v1 }
 0x231   :  { %951 = vmatpush1.bf16.msra.mxu0 %v2930_v7 }
 0x232   :  { %952 = vmatprep.subr.bf16.mxu0 %v2936_v8  ;;  %v2736_v8 = vld [vmem:[%s3599_s1 + $0x8] ss:$12 sps:$4 sm:$0xff]  }
 0x233   :  { %2586 = vmatpush3.bf16.msra.mxu1 %v2736_v8  ;;  %v998_v8 = vrot.slane %v2308_v11, 4 }
 0x234   :  { %2587 = vmatprep.subr.bf16.mxu1 %v2882_v1 }
 0x235   :  { %953 = vmatpush1.bf16.msra.mxu0 %v2942_v9  ;;  %v2737_v9 = vld [vmem:[%s3599_s1 + $0x20] ss:$12 sps:$4 sm:$0xff]  }
 0x236   :  { %954 = vmatprep.subr.bf16.mxu0 %v2948_v10  ;;  %v2738_v10 = vld [vmem:[%s3599_s1 + $0x38] ss:$12 sps:$4 sm:$0xff]  }
 0x237   :  { %2588 = vmatpush3.bf16.msra.mxu1 %v2737_v9  ;;  %v989_v9 = vunpack.c.l.bf16 %v2308_v11 }
 0x238   :  { %2589 = vmatprep.subr.bf16.mxu1 %v2882_v1 }
 0x239   :  { %955 = vmatpush1.bf16.msra.mxu0 %v2957_v12  ;;  %v2740_v12 = vld [vmem:[%s3599_s1 + $0x68] ss:$12 sps:$4 sm:$0xff]  }
 0x23a   :  { %956 = vmatprep.subr.bf16.mxu0 %v2966_v14  ;;  %v2741_v14 = vld [vmem:[%s3599_s1 + $0x80] ss:$12 sps:$4 sm:$0xff]  }
 0x23b   :  { %2590 = vmatpush3.bf16.msra.mxu1 %v2738_v10 }
 0x23c   :  { %2591 = vmatprep.subr.bf16.mxu1 %v2882_v1 }
 0x23d   :  { %957 = vmatpush1.bf16.msra.mxu0 %v2972_v15  ;;  %v2742_v15 = vld [vmem:[%s3599_s1 + $0x98] ss:$12 sps:$4 sm:$0xff]  }
 0x23e   :  { %958 = vmatprep.subr.bf16.mxu0 %v2982_v17  ;;  %v2743_v17 = vld [vmem:[%s3599_s1 + $0xb0] ss:$12 sps:$4 sm:$0xff]  }
 0x241   :  { %959 = vmatpush1.bf16.msra.mxu0 %v2988_v18  ;;  %v2279_v18 = vld [vmem:[%s3600_s0 + $0x18] sm:$0xff] }
 0x242   :  { %960 = vmatprep.subr.bf16.mxu0 %v2993_v19  ;;  %v724_v19 = vrot.slane %v2279_v18, 4 }
 0x244   :  { %v726_v13 = vunpack.c.l.bf16 %v724_v19 }
 0x245   :  { %961 = vmatpush1.bf16.msra.mxu0 %v3004_v21  ;;  %v715_v21 = vunpack.c.l.bf16 %v2279_v18 }
 0x246   :  { %962 = vmatprep.subr.bf16.mxu0 %v3012_v23 }
 0x249   :  { %963 = vmatpush1.bf16.msra.mxu0 %v3020_v24 }
 0x24a   :  { %1222 = vmatprep.subr.bf16.mxu0 %v2909_v0  ;;  %v2739_v0 = vld [vmem:[%s3599_s1 + $0x50] ss:$12 sps:$4 sm:$0xff]  }
 0x24b   :  { %2592 = vmatpush3.bf16.msra.mxu1 %v2739_v0 }
 0x24c   :  { %2593 = vmatprep.subr.bf16.mxu1 %v2882_v1 }
 0x24f   :  { %2594 = vmatpush3.bf16.msra.mxu1 %v2740_v12  ;;  %v1000_v12 = vunpack.c.l.bf16 %v998_v8 }
 0x250   :  { %2595 = vmatprep.subr.bf16.mxu1 %v2882_v1 }
 0x253   :  { %2596 = vmatpush3.bf16.msra.mxu1 %v2741_v14 }
 0x254   :  { %2597 = vmatprep.subr.bf16.mxu1 %v2882_v1 }
 0x257   :  { %2598 = vmatpush3.bf16.msra.mxu1 %v2742_v15 }
 0x258   :  { %2599 = vmatprep.subr.bf16.mxu1 %v2882_v1 }
 0x25b   :  { %2600 = vmatpush3.bf16.msra.mxu1 %v2743_v17 }
 0x25c   :  { %2605 = vmatprep.subr.bf16.mxu1 %v2882_v1 }
 0x2ff   :  { %v708_v23 = vpop.f32.mrb[8].mxu0  ;;  %v833_v24 = vpop.f32.mrb[8].mxu1 }
 0x300   :  { %v716_v16 = vadd.f32 %v715_v21, %v708_v23  ;;  %v710_v20 = vpop.f32.mrb[9].mxu0  ;;  %v2583_v22 = vpop.f32.mrb[9].mxu1  ;;  %v834_v37 = vadd.f32 %v3096_v56, %v833_v24 }
 0x301   :  { %v712_v25 = vpop.f32.mrb[10].mxu0  ;;  %v836_v26 = vpop.f32.mrb[10].mxu1  ;;  %v727_v30 = vadd.f32 %v726_v13, %v710_v20 }
 0x302   :  { %v2297_v27 = vmul.f32 -1.442695, %v716_v16  ;;  %v713_v28 = vpop.f32.mrb[11].mxu0  ;;  %v2584_v29 = vpop.f32.mrb[11].mxu1  ;;  %v3361_v26 = vld [vmem:[%s3600_s0 + $0x2c] ss:$12 sps:$4 sm:$0xff]  }
 0x303   :  { %v2298_v31 = vmul.f32 -1.442695, %v727_v30  ;;  %v1024_v28 = vunpack.c.l.bf16 %v3361_v26 }
 0x304   :  { %2821 = vpow2.f32 %v2297_v27 }
 0x305   :  { %2823 = vpow2.f32 %v2298_v31 }
 0x30e   :  { %v2822_v32 = vpop.eup %2821 }
 0x30f   :  { %v720_v33 = vadd.f32 1.0, %v2822_v32  ;;  %v2824_v34 = vpop.eup %2823 }
 0x310   :  { %v731_v35 = vadd.f32 1.0, %v2824_v34 }
 0x311   :  { %2825 = vrcp.f32 %v720_v33 }
 0x312   :  { %2827 = vrcp.f32 %v731_v35 }
 0x31b   :  { %v2826_v38 = vpop.eup %2825 }
 0x31c   :  { %v839_v39 = vmul.f32 %v2826_v38, %v834_v37  ;;  %v2828_v41 = vpop.eup %2827 }
 0x31d   :  { %v842_v42 = vsub.f32 1.0, %v2828_v41  ;;  %v844_v45 = vmul.f32 %v2828_v41, %v3172_v5  ;;  %v2770_v5 = vld [vmem:[%s3599_s1 + $0xb0] ss:$12 sps:$4 sm:$0xff]   ;;  %v3385_v41 = vld [vmem:[%s3599_s1] ss:$12 sps:$4 sm:$0xff]  }
 0x31e   :  { %v840_v40 = vadd.f32 %v839_v39, %v750_v36 }
 0x320   :  { %2829 = vtanh.f32 %v840_v40  ;;  %v3380_v40 = vld [vmem:[%s3599_s1 + $0x4] ss:$12 sps:$4 sm:$0xff]  }
 0x32a   :  { %v2830_v43 = vpop.eup %2829 }
 0x32b   :  { %v843_v44 = vmul.f32 %v2830_v43, %v842_v42  ;;  %v2774_v42 = vld [vmem:[%s3599_s1 + $0x8] ss:$12 sps:$4 sm:$0xff]  }
 0x32c   :  { %v3395_v43 = vld [vmem:[%s3599_s1 + $0x1c] ss:$12 sps:$4 sm:$0xff]  }
 0x32d   :  { %v3237_v46 = vadd.f32 %v844_v45, %v843_v44  ;;  %v3401_v44 = vld [vmem:[%s3599_s1 + $0x18] ss:$12 sps:$4 sm:$0xff]   ;;  %v2778_v45 = vld [vmem:[%s3599_s1 + $0x20] ss:$12 sps:$4 sm:$0xff]  }
 0x32f   :  { %2307 = vst [vmem:[%s3602_s3 + $0x10] sm:$0xff] %v3237_v46  ;;  %v851_v47 = vpack.c.bf16 %v3237_v46, %v3237_v46 }
 0x331   :  { %981 = vmatmul.mubr.bf16.vlgmr.msra.gmra.mrb[12].mxu0 %v851_v47  ;;  %2602 = vmatmul.mubr.bf16.vlgmr.msra.gmra.mrb[12].mxu1 %v851_v47  ;;  %v2780_v47 = vld [vmem:[%s3599_s1 + $0x50] ss:$12 sps:$4 sm:$0xff]  }
 0x332   :  { %1223 = vmatpush1.bf16.msra.mxu0 %v2916_v3  ;;  %1254 = vmatprep.mubr.bf16.mxu0 %v2883_v2  ;;  %v3261_v3 = vld [vmem:[%s3599_s1 + $0x34] ss:$12 sps:$4 sm:$0xff]  }
 0x333   :  { %2621 = vmatprep.mubr.msk.bf16.mxu1 %vm2884_vm0, %v2882_v1  ;;  %2606 = vmatpush3.bf16.msra.mxu1 %v2744_v48  ;;  %v2781_v48 = vld [vmem:[%s3599_s1 + $0x68] ss:$12 sps:$4 sm:$0xff]  }
 0x334   :  { %2607 = vmatprep.subr.bf16.mxu1 %v2882_v1  ;;  %1224 = vmatprep.subr.bf16.mxu0 %v2927_v6  ;;  %v3277_v6 = vld [vmem:[%s3599_s1 + $0x4c] ss:$12 sps:$4 sm:$0xff]  }
 0x336   :  { %1225 = vmatpush1.bf16.msra.mxu0 %v2930_v7  ;;  %v3283_v7 = vld [vmem:[%s3599_s1 + $0x48] ss:$12 sps:$4 sm:$0xff]  }
 0x337   :  { %2608 = vmatpush3.bf16.msra.mxu1 %v2746_v49  ;;  %1226 = vmatprep.subr.bf16.mxu0 %v3261_v3  ;;  %v2782_v49 = vld [vmem:[%s3599_s1 + $0x80] ss:$12 sps:$4 sm:$0xff]  }
 0x338   :  { %2609 = vmatprep.subr.bf16.mxu1 %v2882_v1 }
 0x33a   :  { %1227 = vmatpush1.bf16.msra.mxu0 %v3267_v50 }
 0x33b   :  { %2610 = vmatpush3.bf16.msra.mxu1 %v2750_v51  ;;  %1228 = vmatprep.subr.bf16.mxu0 %v3277_v6  ;;  %v2783_v51 = vld [vmem:[%s3599_s1 + $0x98] ss:$12 sps:$4 sm:$0xff]  }
 0x33c   :  { %2611 = vmatprep.subr.bf16.mxu1 %v2882_v1 }
 0x33e   :  { %1229 = vmatpush1.bf16.msra.mxu0 %v3283_v7 }
 0x33f   :  { %2612 = vmatpush3.bf16.msra.mxu1 %v2754_v52  ;;  %1230 = vmatprep.subr.bf16.mxu0 %v3293_v53  ;;  %v2784_v52 = vld [vmem:[%s3599_s1 + $0xb0] ss:$12 sps:$4 sm:$0xff]  }
 0x340   :  { %2613 = vmatprep.subr.bf16.mxu1 %v2882_v1 }
 0x342   :  { %1231 = vmatpush1.bf16.msra.mxu0 %v3299_v54 }
 0x343   :  { %2614 = vmatpush3.bf16.msra.mxu1 %v2758_v55  ;;  %1232 = vmatprep.subr.bf16.mxu0 %v3308_v57  ;;  %v2337_v55 = vld [vmem:[%s3600_s0 + $0x30] sm:$0xff] }
 0x344   :  { %2615 = vmatprep.subr.bf16.mxu1 %v2882_v1 }
 0x346   :  { %1233 = vmatpush1.bf16.msra.mxu0 %v3314_v58 }
 0x347   :  { %2616 = vmatpush3.bf16.msra.mxu1 %v2762_v59  ;;  %1234 = vmatprep.subr.bf16.mxu0 %v3324_v60  ;;  %v1272_v59 = vrot.slane %v2337_v55, 4 }
 0x348   :  { %2617 = vmatprep.subr.bf16.mxu1 %v2882_v1 }
 0x349   :  { %v1274_v8 = vunpack.c.l.bf16 %v1272_v59 }
 0x34a   :  { %1235 = vmatpush1.bf16.msra.mxu0 %v3330_v61 }
 0x34b   :  { %2618 = vmatpush3.bf16.msra.mxu1 %v2766_v62  ;;  %1236 = vmatprep.subr.bf16.mxu0 %v3340_v63  ;;  %v1263_v62 = vunpack.c.l.bf16 %v2337_v55 }
 0x34c   :  { %2619 = vmatprep.subr.bf16.mxu1 %v2882_v1 }
 0x34e   :  { %1237 = vmatpush1.bf16.msra.mxu0 %v3346_v4 }
 0x34f   :  { %2620 = vmatpush3.bf16.msra.mxu1 %v2770_v5  ;;  %1496 = vmatprep.subr.bf16.mxu0 %v3380_v40 }
 0x350   :  { %2625 = vmatprep.subr.bf16.mxu1 %v2882_v1 }
 0x404   :  { %v982_v10 = vpop.f32.mrb[12].mxu0  ;;  %v1107_v0 = vpop.f32.mrb[12].mxu1 }
 0x405   :  { %v990_v14 = vadd.f32 %v989_v9, %v982_v10  ;;  %v984_v15 = vpop.f32.mrb[13].mxu0  ;;  %v2603_v17 = vpop.f32.mrb[13].mxu1  ;;  %v1108_v29 = vadd.f32 %v3096_v56, %v1107_v0 }
 0x406   :  { %v986_v18 = vpop.f32.mrb[14].mxu0  ;;  %v1110_v19 = vpop.f32.mrb[14].mxu1  ;;  %v1001_v13 = vadd.f32 %v1000_v12, %v984_v15 }
 0x407   :  { %v2326_v21 = vmul.f32 -1.442695, %v990_v14  ;;  %v987_v23 = vpop.f32.mrb[15].mxu0  ;;  %v2604_v24 = vpop.f32.mrb[15].mxu1 }
 0x408   :  { %v2327_v16 = vmul.f32 -1.442695, %v1001_v13 }
 0x409   :  { %2831 = vpow2.f32 %v2326_v21 }
 0x40a   :  { %2833 = vpow2.f32 %v2327_v16 }
 0x413   :  { %v2832_v20 = vpop.eup %2831 }
 0x414   :  { %v994_v22 = vadd.f32 1.0, %v2832_v20  ;;  %v2834_v25 = vpop.eup %2833  ;;  %v1298_v20 = vunpack.c.h.bf16 %v3361_v26 }
 0x415   :  { %v1005_v27 = vadd.f32 1.0, %v2834_v25 }
 0x416   :  { %2835 = vrcp.f32 %v994_v22 }
 0x417   :  { %2837 = vrcp.f32 %v1005_v27 }
 0x420   :  { %v2836_v30 = vpop.eup %2835 }
 0x421   :  { %v1113_v31 = vmul.f32 %v2836_v30, %v1108_v29  ;;  %v2838_v33 = vpop.eup %2837 }
 0x422   :  { %v1116_v34 = vsub.f32 1.0, %v2838_v33  ;;  %v1118_v37 = vmul.f32 %v2838_v33, %v3237_v46  ;;  %v2779_v46 = vld [vmem:[%s3599_s1 + $0x38] ss:$12 sps:$4 sm:$0xff]  }
 0x423   :  { %v1114_v32 = vadd.f32 %v1113_v31, %v1024_v28 }
 0x425   :  { %2839 = vtanh.f32 %v1114_v32 }
 0x42f   :  { %v2840_v35 = vpop.eup %2839 }
 0x430   :  { %v1117_v36 = vmul.f32 %v2840_v35, %v1116_v34  ;;  %v2785_v35 = vld [vmem:[%s3599_s1 + $0x8] ss:$12 sps:$4 sm:$0xff]  }
 0x432   :  { %v3366_v38 = vadd.f32 %v1118_v37, %v1117_v36  ;;  %v2786_v36 = vld [vmem:[%s3599_s1 + $0x20] ss:$12 sps:$4 sm:$0xff]   ;;  %v2787_v37 = vld [vmem:[%s3599_s1 + $0x38] ss:$12 sps:$4 sm:$0xff]  }
 0x434   :  { %2336 = vst [vmem:[%s3602_s3 + $0x18] sm:$0xff] %v3366_v38  ;;  %v1125_v39 = vpack.c.bf16 %v3366_v38, %v3366_v38 }
 0x436   :  { %1255 = vmatmul.mubr.bf16.vlgmr.msra.gmra.mrb[16].mxu0 %v1125_v39  ;;  %2622 = vmatmul.mubr.bf16.vlgmr.msra.gmra.mrb[16].mxu1 %v1125_v39  ;;  %v2789_v39 = vld [vmem:[%s3599_s1 + $0x68] ss:$12 sps:$4 sm:$0xff]  }
 0x437   :  { %1528 = vmatprep.mubr.bf16.mxu0 %v2883_v2  ;;  %2641 = vmatprep.mubr.msk.bf16.mxu1 %vm2884_vm0, %v2882_v1 }
 0x438   :  { %1497 = vmatpush1.bf16.msra.mxu0 %v3385_v41  ;;  %2626 = vmatpush3.bf16.msra.mxu1 %v2774_v42  ;;  %v2791_v42 = vld [vmem:[%s3599_s1 + $0x98] ss:$12 sps:$4 sm:$0xff]  }
 0x439   :  { %2627 = vmatprep.subr.bf16.mxu1 %v2882_v1  ;;  %1498 = vmatprep.subr.bf16.mxu0 %v3395_v43 }
 0x43c   :  { %1499 = vmatpush1.bf16.msra.mxu0 %v3401_v44  ;;  %2628 = vmatpush3.bf16.msra.mxu1 %v2778_v45  ;;  %v2792_v45 = vld [vmem:[%s3599_s1 + $0xb0] ss:$12 sps:$4 sm:$0xff]  }
 0x43d   :  { %1500 = vmatprep.subr.bf16.mxu0 %v3261_v3  ;;  %2629 = vmatprep.subr.bf16.mxu1 %v2882_v1 }
 0x440   :  { %1501 = vmatpush1.bf16.msra.mxu0 %v3267_v50  ;;  %2630 = vmatpush3.bf16.msra.mxu1 %v2779_v46  ;;  %v2366_v46 = vld [vmem:[%s3600_s0 + $0x3c] sm:$0xff] }
 0x441   :  { %1502 = vmatprep.subr.bf16.mxu0 %v3277_v6  ;;  %2631 = vmatprep.subr.bf16.mxu1 %v2882_v1 }
 0x444   :  { %1503 = vmatpush1.bf16.msra.mxu0 %v3283_v7  ;;  %2632 = vmatpush3.bf16.msra.mxu1 %v2780_v47  ;;  %v1546_v47 = vrot.slane %v2366_v46, 4 }
 0x445   :  { %1504 = vmatprep.subr.bf16.mxu0 %v3293_v53  ;;  %2633 = vmatprep.subr.bf16.mxu1 %v2882_v1 }
 0x448   :  { %1505 = vmatpush1.bf16.msra.mxu0 %v3299_v54  ;;  %2634 = vmatpush3.bf16.msra.mxu1 %v2781_v48  ;;  %v1537_v48 = vunpack.c.l.bf16 %v2366_v46 }
 0x449   :  { %1506 = vmatprep.subr.bf16.mxu0 %v3308_v57  ;;  %2635 = vmatprep.subr.bf16.mxu1 %v2882_v1 }
 0x44c   :  { %1507 = vmatpush1.bf16.msra.mxu0 %v3314_v58  ;;  %2636 = vmatpush3.bf16.msra.mxu1 %v2782_v49 }
 0x44d   :  { %1508 = vmatprep.subr.bf16.mxu0 %v3324_v60  ;;  %2637 = vmatprep.subr.bf16.mxu1 %v2882_v1 }
 0x450   :  { %1509 = vmatpush1.bf16.msra.mxu0 %v3330_v61  ;;  %2638 = vmatpush3.bf16.msra.mxu1 %v2783_v51 }
 0x451   :  { %1510 = vmatprep.subr.bf16.mxu0 %v3340_v63  ;;  %2639 = vmatprep.subr.bf16.mxu1 %v2882_v1 }
 0x454   :  { %1511 = vmatpush1.bf16.msra.mxu0 %v3346_v4  ;;  %2640 = vmatpush3.bf16.msra.mxu1 %v2784_v52  ;;  %v1548_v52 = vunpack.c.l.bf16 %v1546_v47 }
 0x455   :  { %1770 = vmatprep.subr.bf16.mxu0 %v3380_v40  ;;  %2645 = vmatprep.subr.bf16.mxu1 %v2882_v1 }
 0x509   :  { %v1256_v5 = vpop.f32.mrb[16].mxu0  ;;  %v1381_v11 = vpop.f32.mrb[16].mxu1 }
 0x50a   :  { %v1264_v9 = vadd.f32 %v1263_v62, %v1256_v5  ;;  %v1258_v10 = vpop.f32.mrb[17].mxu0  ;;  %v2623_v0 = vpop.f32.mrb[17].mxu1  ;;  %v1382_v22 = vadd.f32 %v3096_v56, %v1381_v11 }
 0x50b   :  { %v1260_v12 = vpop.f32.mrb[18].mxu0  ;;  %v1384_v14 = vpop.f32.mrb[18].mxu1  ;;  %v1275_v19 = vadd.f32 %v1274_v8, %v1258_v10 }
 0x50c   :  { %v2355_v15 = vmul.f32 -1.442695, %v1264_v9  ;;  %v1261_v17 = vpop.f32.mrb[19].mxu0  ;;  %v2624_v18 = vpop.f32.mrb[19].mxu1 }
 0x50d   :  { %v2356_v21 = vmul.f32 -1.442695, %v1275_v19  ;;  %v3517_v18 = vld [vmem:[%s3600_s0 + $0x44] ss:$12 sps:$4 sm:$0xff]  }
 0x50e   :  { %2841 = vpow2.f32 %v2355_v15 }
 0x50f   :  { %2843 = vpow2.f32 %v2356_v21  ;;  %v1572_v21 = vunpack.c.l.bf16 %v3517_v18 }
 0x518   :  { %v2842_v23 = vpop.eup %2841 }
 0x519   :  { %v1268_v24 = vadd.f32 1.0, %v2842_v23  ;;  %v2844_v13 = vpop.eup %2843 }
 0x51a   :  { %v1279_v16 = vadd.f32 1.0, %v2844_v13 }
 0x51b   :  { %2845 = vrcp.f32 %v1268_v24 }
 0x51c   :  { %2847 = vrcp.f32 %v1279_v16 }
 0x525   :  { %v2846_v25 = vpop.eup %2845 }
 0x526   :  { %v1387_v27 = vmul.f32 %v2846_v25, %v1382_v22  ;;  %v2848_v29 = vpop.eup %2847 }
 0x527   :  { %v1390_v30 = vsub.f32 1.0, %v2848_v29  ;;  %v1392_v33 = vmul.f32 %v2848_v29, %v3366_v38  ;;  %v2788_v38 = vld [vmem:[%s3599_s1 + $0x50] ss:$12 sps:$4 sm:$0xff]  }
 0x528   :  { %v1388_v28 = vadd.f32 %v1387_v27, %v1298_v20 }
 0x52a   :  { %2849 = vtanh.f32 %v1388_v28 }
 0x534   :  { %v2850_v31 = vpop.eup %2849 }
 0x535   :  { %v1391_v32 = vmul.f32 %v2850_v31, %v1390_v30 }
 0x537   :  { %v3452_v34 = vadd.f32 %v1392_v33, %v1391_v32 }
 0x539   :  { %2365 = vst [vmem:[%s3602_s3 + $0x20] sm:$0xff] %v3452_v34  ;;  %v1399_v26 = vpack.c.bf16 %v3452_v34, %v3452_v34 }
 0x53b   :  { %1529 = vmatmul.mubr.bf16.vlgmr.msra.gmra.mrb[20].mxu0 %v1399_v26  ;;  %2642 = vmatmul.mubr.bf16.vlgmr.msra.gmra.mrb[20].mxu1 %v1399_v26 }
 0x53c   :  { %1771 = vmatpush1.bf16.msra.mxu0 %v3385_v41  ;;  %1802 = vmatprep.mubr.bf16.mxu0 %v2883_v2 }
 0x53d   :  { %1772 = vmatprep.subr.bf16.mxu0 %v3395_v43  ;;  %2661 = vmatprep.mubr.msk.bf16.mxu1 %vm2884_vm0, %v2882_v1 }
 0x53e   :  { %2646 = vmatpush3.bf16.msra.mxu1 %v2785_v35 }
 0x53f   :  { %2647 = vmatprep.subr.bf16.mxu1 %v2882_v1 }
 0x540   :  { %1773 = vmatpush1.bf16.msra.mxu0 %v3401_v44 }
 0x541   :  { %1774 = vmatprep.subr.bf16.mxu0 %v3261_v3 }
 0x542   :  { %2648 = vmatpush3.bf16.msra.mxu1 %v2786_v36 }
 0x543   :  { %2649 = vmatprep.subr.bf16.mxu1 %v2882_v1 }
 0x544   :  { %1775 = vmatpush1.bf16.msra.mxu0 %v3267_v50 }
 0x545   :  { %1776 = vmatprep.subr.bf16.mxu0 %v3277_v6 }
 0x546   :  { %2650 = vmatpush3.bf16.msra.mxu1 %v2787_v37 }
 0x547   :  { %2651 = vmatprep.subr.bf16.mxu1 %v2882_v1 }
 0x548   :  { %1777 = vmatpush1.bf16.msra.mxu0 %v3283_v7 }
 0x549   :  { %1778 = vmatprep.subr.bf16.mxu0 %v3293_v53 }
 0x54a   :  { %2652 = vmatpush3.bf16.msra.mxu1 %v2788_v38 }
 0x54b   :  { %2653 = vmatprep.subr.bf16.mxu1 %v2882_v1 }
 0x54c   :  { %1779 = vmatpush1.bf16.msra.mxu0 %v3299_v54 }
 0x54d   :  { %1780 = vmatprep.subr.bf16.mxu0 %v3308_v57 }
 0x54e   :  { %2654 = vmatpush3.bf16.msra.mxu1 %v2789_v39 }
 0x54f   :  { %2655 = vmatprep.subr.bf16.mxu1 %v2882_v1 }
 0x550   :  { %1781 = vmatpush1.bf16.msra.mxu0 %v3314_v58 }
 0x551   :  { %1782 = vmatprep.subr.bf16.mxu0 %v3324_v60 }
 0x554   :  { %1783 = vmatpush1.bf16.msra.mxu0 %v3330_v61 }
 0x555   :  { %1784 = vmatprep.subr.bf16.mxu0 %v3340_v63 }
 0x558   :  { %1785 = vmatpush1.bf16.msra.mxu0 %v3346_v4 }
 0x559   :  { %2044 = vmatprep.subr.bf16.mxu0 %v3380_v40  ;;  %v2790_v40 = vld [vmem:[%s3599_s1 + $0x80] ss:$12 sps:$4 sm:$0xff]  }
 0x55a   :  { %2656 = vmatpush3.bf16.msra.mxu1 %v2790_v40  ;;  %v1846_v40 = vunpack.c.h.bf16 %v3517_v18 }
 0x55b   :  { %2657 = vmatprep.subr.bf16.mxu1 %v2882_v1 }
 0x55e   :  { %2658 = vmatpush3.bf16.msra.mxu1 %v2791_v42  ;;  %v2881_v42 = vld [vmem:[%s3601_s2] ss:$0 sm:$0xff] }
 0x55f   :  { %2659 = vmatprep.subr.bf16.mxu1 %v2882_v1 }
 0x562   :  { %2660 = vmatpush3.bf16.msra.mxu1 %v2792_v45 }
 0x563   :  { %2665 = vmatprep.subr.bf16.mxu1 %v2882_v1 }
 0x60e   :  { %v1530_v49 = vpop.f32.mrb[20].mxu0  ;;  %v1655_v51 = vpop.f32.mrb[20].mxu1 }
 0x60f   :  { %v1538_v55 = vadd.f32 %v1537_v48, %v1530_v49  ;;  %v1532_v59 = vpop.f32.mrb[21].mxu0  ;;  %v2643_v62 = vpop.f32.mrb[21].mxu1  ;;  %v1656_v23 = vadd.f32 %v3096_v56, %v1655_v51 }
 0x610   :  { %v1534_v5 = vpop.f32.mrb[22].mxu0  ;;  %v1658_v11 = vpop.f32.mrb[22].mxu1  ;;  %v1549_v0 = vadd.f32 %v1548_v52, %v1532_v59 }
 0x611   :  { %v2384_v8 = vmul.f32 -1.442695, %v1538_v55  ;;  %v1535_v9 = vpop.f32.mrb[23].mxu0  ;;  %v2644_v10 = vpop.f32.mrb[23].mxu1  ;;  %v2424_v11 = vld [vmem:[%s3600_s0 + $0x54] sm:$0xff] }
 0x612   :  { %v2385_v12 = vmul.f32 -1.442695, %v1549_v0  ;;  %v2085_v9 = vunpack.c.l.bf16 %v2424_v11 }
 0x613   :  { %2851 = vpow2.f32 %v2384_v8  ;;  %v2094_v8 = vrot.slane %v2424_v11, 4 }
 0x614   :  { %2853 = vpow2.f32 %v2385_v12 }
 0x615   :  { %v2096_v12 = vunpack.c.l.bf16 %v2094_v8 }
 0x61d   :  { %v2852_v14 = vpop.eup %2851 }
 0x61e   :  { %v1542_v15 = vadd.f32 1.0, %v2852_v14  ;;  %v2854_v17 = vpop.eup %2853 }
 0x61f   :  { %v1553_v19 = vadd.f32 1.0, %v2854_v17 }
 0x620   :  { %2855 = vrcp.f32 %v1542_v15 }
 0x621   :  { %2857 = vrcp.f32 %v1553_v19 }
 0x62a   :  { %v2856_v24 = vpop.eup %2855 }
 0x62b   :  { %v1661_v13 = vmul.f32 %v2856_v24, %v1656_v23  ;;  %v2858_v20 = vpop.eup %2857 }
 0x62c   :  { %v1664_v22 = vsub.f32 1.0, %v2858_v20  ;;  %v1666_v28 = vmul.f32 %v2858_v20, %v3452_v34 }
 0x62d   :  { %v1662_v16 = vadd.f32 %v1661_v13, %v1572_v21 }
 0x62f   :  { %2859 = vtanh.f32 %v1662_v16 }
 0x639   :  { %v2860_v25 = vpop.eup %2859 }
 0x63a   :  { %v1665_v27 = vmul.f32 %v2860_v25, %v1664_v22 }
 0x63c   :  { %v3522_v29 = vadd.f32 %v1666_v28, %v1665_v27  ;;  %v2425_v27 = vld [vmem:[%s3600_s0 + $0x5c] sm:$0xf] }
 0x63e   :  { %2394 = vst [vmem:[%s3602_s3 + $0x28] sm:$0xff] %v3522_v29  ;;  %v1673_v56 = vpack.c.bf16 %v3522_v29, %v3522_v29 }
 0x640   :  { %1803 = vmatmul.mubr.bf16.vlgmr.msra.gmra.mrb[24].mxu0 %v1673_v56  ;;  %2662 = vmatmul.mubr.bf16.vlgmr.msra.gmra.mrb[24].mxu1 %v1673_v56 }
 0x641   :  { %2045 = vmatpush1.bf16.msra.mxu0 %v3385_v41  ;;  %2076 = vmatprep.mubr.bf16.mxu0 %v2883_v2  ;;  %v2793_v2 = vld [vmem:[%s3599_s1 + $0x8] ss:$12 sps:$4 sm:$0xff]  }
 0x642   :  { %2046 = vmatprep.subr.bf16.mxu0 %v3395_v43  ;;  %2681 = vmatprep.mubr.msk.bf16.mxu1 %vm2884_vm0, %v2882_v1 }
 0x643   :  { %2666 = vmatpush3.bf16.msra.mxu1 %v2793_v2 }
 0x644   :  { %2667 = vmatprep.subr.bf16.mxu1 %v2882_v1 }
 0x645   :  { %2047 = vmatpush1.bf16.msra.mxu0 %v3401_v44 }
 0x646   :  { %2048 = vmatprep.subr.bf16.mxu0 %v3261_v3  ;;  %v2794_v3 = vld [vmem:[%s3599_s1 + $0x20] ss:$12 sps:$4 sm:$0xff]  }
 0x647   :  { %2668 = vmatpush3.bf16.msra.mxu1 %v2794_v3 }
 0x648   :  { %2669 = vmatprep.subr.bf16.mxu1 %v2882_v1 }
 0x649   :  { %2049 = vmatpush1.bf16.msra.mxu0 %v3267_v50  ;;  %v2795_v50 = vld [vmem:[%s3599_s1 + $0x38] ss:$12 sps:$4 sm:$0xff]  }
 0x64a   :  { %2050 = vmatprep.subr.bf16.mxu0 %v3277_v6  ;;  %v2796_v6 = vld [vmem:[%s3599_s1 + $0x50] ss:$12 sps:$4 sm:$0xff]  }
 0x64b   :  { %2670 = vmatpush3.bf16.msra.mxu1 %v2795_v50 }
 0x64c   :  { %2671 = vmatprep.subr.bf16.mxu1 %v2882_v1 }
 0x64d   :  { %2051 = vmatpush1.bf16.msra.mxu0 %v3283_v7  ;;  %v2797_v7 = vld [vmem:[%s3599_s1 + $0x68] ss:$12 sps:$4 sm:$0xff]  }
 0x64e   :  { %2052 = vmatprep.subr.bf16.mxu0 %v3293_v53  ;;  %v2798_v53 = vld [vmem:[%s3599_s1 + $0x80] ss:$12 sps:$4 sm:$0xff]  }
 0x64f   :  { %2672 = vmatpush3.bf16.msra.mxu1 %v2796_v6 }
 0x650   :  { %2673 = vmatprep.subr.bf16.mxu1 %v2882_v1 }
 0x651   :  { %2053 = vmatpush1.bf16.msra.mxu0 %v3299_v54  ;;  %v2799_v54 = vld [vmem:[%s3599_s1 + $0x98] ss:$12 sps:$4 sm:$0xff]  }
 0x652   :  { %2054 = vmatprep.subr.bf16.mxu0 %v3308_v57  ;;  %v2800_v57 = vld [vmem:[%s3599_s1 + $0xb0] ss:$12 sps:$4 sm:$0xff]  }
 0x653   :  { %2674 = vmatpush3.bf16.msra.mxu1 %v2797_v7 }
 0x654   :  { %2675 = vmatprep.subr.bf16.mxu1 %v2882_v1 }
 0x655   :  { %2055 = vmatpush1.bf16.msra.mxu0 %v3314_v58  ;;  %v2395_v58 = vld [vmem:[%s3600_s0 + $0x48] sm:$0xff] }
 0x656   :  { %2056 = vmatprep.subr.bf16.mxu0 %v3324_v60  ;;  %v1820_v60 = vrot.slane %v2395_v58, 4 }
 0x657   :  { %2676 = vmatpush3.bf16.msra.mxu1 %v2798_v53 }
 0x658   :  { %2677 = vmatprep.subr.bf16.mxu1 %v2882_v1  ;;  %v1822_v41 = vunpack.c.l.bf16 %v1820_v60 }
 0x659   :  { %2057 = vmatpush1.bf16.msra.mxu0 %v3330_v61  ;;  %v1811_v61 = vunpack.c.l.bf16 %v2395_v58 }
 0x65a   :  { %2058 = vmatprep.subr.bf16.mxu0 %v3340_v63 }
 0x65b   :  { %2678 = vmatpush3.bf16.msra.mxu1 %v2799_v54 }
 0x65c   :  { %2679 = vmatprep.subr.bf16.mxu1 %v2882_v1 }
 0x65d   :  { %2059 = vmatpush1.bf16.msra.mxu0 %v3346_v4 }
 0x65f   :  { %2680 = vmatpush3.bf16.msra.mxu1 %v2800_v57 }
 0x713   :  { %v1804_v63 = vpop.f32.mrb[24].mxu0  ;;  %v1929_v4 = vpop.f32.mrb[24].mxu1 }
 0x714   :  { %v1812_v43 = vadd.f32 %v1811_v61, %v1804_v63  ;;  %v1806_v44 = vpop.f32.mrb[25].mxu0  ;;  %v2663_v30 = vpop.f32.mrb[25].mxu1  ;;  %v1930_v45 = vadd.f32 %v2881_v42, %v1929_v4 }
 0x715   :  { %v1808_v31 = vpop.f32.mrb[26].mxu0  ;;  %v1932_v32 = vpop.f32.mrb[26].mxu1  ;;  %v1823_v35 = vadd.f32 %v1822_v41, %v1806_v44 }
 0x716   :  { %v2413_v33 = vmul.f32 -1.442695, %v1812_v43  ;;  %v1809_v34 = vpop.f32.mrb[27].mxu0  ;;  %v2664_v26 = vpop.f32.mrb[27].mxu1 }
 0x717   :  { %v2414_v1 = vmul.f32 -1.442695, %v1823_v35 }
 0x718   :  { %2861 = vpow2.f32 %v2413_v33 }
 0x719   :  { %2863 = vpow2.f32 %v2414_v1 }
 0x722   :  { %v2862_v36 = vpop.eup %2861 }
 0x723   :  { %v1816_v37 = vadd.f32 1.0, %v2862_v36  ;;  %v2864_v38 = vpop.eup %2863 }
 0x724   :  { %v1827_v39 = vadd.f32 1.0, %v2864_v38 }
 0x725   :  { %2865 = vrcp.f32 %v1816_v37 }
 0x726   :  { %2867 = vrcp.f32 %v1827_v39 }
 0x72f   :  { %v2866_v46 = vpop.eup %2865 }
 0x730   :  { %v1935_v47 = vmul.f32 %v2866_v46, %v1930_v45  ;;  %v2868_v49 = vpop.eup %2867 }
 0x731   :  { %v1938_v51 = vsub.f32 1.0, %v2868_v49  ;;  %v1940_v59 = vmul.f32 %v2868_v49, %v3522_v29  ;;  %v2120_v29 = vunpack.c.l.bf16 %v2425_v27 }
 0x732   :  { %v1936_v48 = vadd.f32 %v1935_v47, %v1846_v40 }
 0x734   :  { %2869 = vtanh.f32 %v1936_v48 }
 0x73e   :  { %v2870_v52 = vpop.eup %2869 }
 0x73f   :  { %v1939_v55 = vmul.f32 %v2870_v52, %v1938_v51 }
 0x741   :  { %v1941_v62 = vadd.f32 %v1940_v59, %v1939_v55 }
 0x743   :  { %2423 = vst [vmem:[%s3602_s3 + $0x30] sm:$0xff] %v1941_v62  ;;  %v1947_v5 = vpack.c.bf16 %v1941_v62, %v1941_v62 }
 0x745   :  { %2077 = vmatmul.mubr.bf16.vlgmr.msra.gmra.mrb[28].mxu0 %v1947_v5  ;;  %2682 = vmatmul.mubr.bf16.vlgmr.msra.gmra.mrb[28].mxu1 %v1947_v5 }
 0x818   :  { %v2078_v10 = vpop.f32.mrb[28].mxu0  ;;  %v2203_v0 = vpop.f32.mrb[28].mxu1 }
 0x819   :  { %v2086_v14 = vadd.f32 %v2085_v9, %v2078_v10  ;;  %v2080_v15 = vpop.f32.mrb[29].mxu0  ;;  %v2683_v17 = vpop.f32.mrb[29].mxu1  ;;  %v2204_v56 = vadd.f32 %v2881_v42, %v2203_v0 }
 0x81a   :  { %v2082_v18 = vpop.f32.mrb[30].mxu0  ;;  %v2206_v19 = vpop.f32.mrb[30].mxu1  ;;  %v2097_v13 = vadd.f32 %v2096_v12, %v2080_v15 }
 0x81b   :  { %v2442_v21 = vmul.f32 -1.442695, %v2086_v14  ;;  %v2083_v23 = vpop.f32.mrb[31].mxu0  ;;  %v2684_v24 = vpop.f32.mrb[31].mxu1 }
 0x81c   :  { %v2443_v16 = vmul.f32 -1.442695, %v2097_v13 }
 0x81d   :  { %2871 = vpow2.f32 %v2442_v21 }
 0x81e   :  { %2873 = vpow2.f32 %v2443_v16 }
 0x827   :  { %v2872_v20 = vpop.eup %2871 }
 0x828   :  { %v2090_v22 = vadd.f32 1.0, %v2872_v20  ;;  %v2874_v25 = vpop.eup %2873 }
 0x829   :  { %v2101_v28 = vadd.f32 1.0, %v2874_v25 }
 0x82a   :  { %2875 = vrcp.f32 %v2090_v22 }
 0x82b   :  { %2877 = vrcp.f32 %v2101_v28 }
 0x834   :  { %v2876_v2 = vpop.eup %2875 }
 0x835   :  { %v2209_v3 = vmul.f32 %v2876_v2, %v2204_v56  ;;  %v2878_v6 = vpop.eup %2877 }
 0x836   :  { %v2212_v7 = vsub.f32 1.0, %v2878_v6  ;;  %v2214_v57 = vmul.f32 %v2878_v6, %v1941_v62 }
 0x837   :  { %v2210_v50 = vadd.f32 %v2209_v3, %v2120_v29 }
 0x839   :  { %2879 = vtanh.f32 %v2210_v50 }
 0x843   :  { %v2880_v53 = vpop.eup %2879 }
 0x844   :  { %v2213_v54 = vmul.f32 %v2880_v53, %v2212_v7 }
 0x846   :  { %v2215_v58 = vadd.f32 %v2214_v57, %v2213_v54 }
 0x848   :  { %2452 = vst [vmem:[%s3602_s3 + $0x38] sm:$0xff] %v2215_v58 }

</bundles_post_ra>
